<compile_context>
chip_gen: v6e
topology: v6e:2x2x1
jax: 0.10.0
libtpu: 0.0.40
codegen_flags: <defaults>
</compile_context>

<pallas_src>
import functools

import jax
import jax.numpy as jnp
from jax.experimental import pallas as pl
from jax.experimental.pallas import tpu as pltpu

EPS = 1e-5
NEG_SLOPE = 0.2
VMEM_LIMIT = 48 * 1024 * 1024   # <= ~48 MiB: safe on v7x (64 MiB phys), big enough for v5e/v6e


def _round_up(x, m):
    return (x + m - 1) // m * m


def _pick_tile(dim, cap, step):
    """Largest multiple of `step`, <= min(cap, dim), that divides `dim`."""
    assert dim % step == 0
    t = max(step, (min(cap, dim) // step) * step)
    while dim % t:
        t -= step
    return t


# ----------------------------------------------------------------------------
# Kernel 1: tiled conv-as-matmul with fused epilogue.
#   grid = (OC_pad//tn, M_pad//tm, K_pad//tk) -> (j, i, k); k is the reduction.
#   * weight block (K_pad, tn) is VMEM-resident across i and k (index (0, j));
#     the kernel slices the current k-chunk with pl.ds.
#   * f32 accumulator scratch, init at k==0, finalize (bias/LeakyReLU/cast) at
#     k==nk-1.
#   * optional BatchNorm stats: per-i partial sum / sum-of-squares blocks of
#     shape (8, tn) written at k==nk-1 (M axis stays "parallel"; the tiny
#     cross-i reduction happens in the wrapper).
# ----------------------------------------------------------------------------
def _conv_matmul_kernel(*refs, has_bias, emit_stats, fuse_lrelu, tk):
    it = iter(refs)
    x_ref = next(it)                              # (tm, tk)    bf16
    w_ref = next(it)                              # (K_pad, tn) bf16 (resident)
    b_ref = next(it) if has_bias else None        # (1, tn)     f32
    o_ref = next(it)                              # (tm, tn)    out dtype
    sum_ref = next(it) if emit_stats else None    # (8, tn)     f32
    ssq_ref = next(it) if emit_stats else None    # (8, tn)     f32
    acc_ref = next(it)                            # (tm, tn)    f32 scratch

    k = pl.program_id(2)
    nk = pl.num_programs(2)

    @pl.when(k == 0)
    def _():
        acc_ref[...] = jnp.zeros_like(acc_ref)

    k_off = pl.multiple_of(k * tk, 128)
    acc_ref[...] += jnp.dot(x_ref[...], w_ref[pl.ds(k_off, tk), :],
                            preferred_element_type=jnp.float32)

    @pl.when(k == nk - 1)
    def _():
        acc = acc_ref[...]
        if has_bias:
            acc = acc + b_ref[...]
        if fuse_lrelu:
            acc = jnp.where(acc >= 0, acc, NEG_SLOPE * acc)
        o_ref[...] = acc.astype(o_ref.dtype)
        if emit_stats:
            s = jnp.sum(acc, axis=0, keepdims=True)         # (1, tn) f32
            q = jnp.sum(acc * acc, axis=0, keepdims=True)   # (1, tn) f32
            sum_ref[...] = jnp.broadcast_to(s, sum_ref.shape)
            ssq_ref[...] = jnp.broadcast_to(q, ssq_ref.shape)


def conv_matmul_pallas(patches, w_mat, bias, *, emit_stats, fuse_lrelu, tm, out_dtype):
    """patches:(M_pad,K_pad) bf16; w_mat:(K_pad,OC_pad) bf16; bias:(1,OC_pad) f32|None."""
    M_pad, K_pad = patches.shape
    K_w, OC_pad = w_mat.shape
    assert K_w == K_pad
    has_bias = bias is not None

    tn = OC_pad if OC_pad <= 512 else _pick_tile(OC_pad, 512, 128)
    tk = _pick_tile(K_pad, 1024, 128)
    nj, ni, nk = OC_pad // tn, M_pad // tm, K_pad // tk

    in_specs = [pl.BlockSpec((tm, tk), lambda j, i, k: (i, k)),
                pl.BlockSpec((K_pad, tn), lambda j, i, k: (0, j))]   # resident weight
    inputs = [patches, w_mat]
    if has_bias:
        in_specs.append(pl.BlockSpec((1, tn), lambda j, i, k: (0, j)))
        inputs.append(bias)

    out_shape = [jax.ShapeDtypeStruct((M_pad, OC_pad), out_dtype)]
    out_specs = [pl.BlockSpec((tm, tn), lambda j, i, k: (i, j))]
    if emit_stats:
        out_shape += [jax.ShapeDtypeStruct((ni * 8, OC_pad), jnp.float32)] * 2
        out_specs += [pl.BlockSpec((8, tn), lambda j, i, k: (i, j)),
                      pl.BlockSpec((8, tn), lambda j, i, k: (i, j))]

    cost = pl.CostEstimate(
        flops=2 * M_pad * K_pad * OC_pad,
        transcendentals=0,
        bytes_accessed=(M_pad * K_pad + K_pad * OC_pad) * 2
                       + M_pad * OC_pad * jnp.dtype(out_dtype).itemsize)

    kern = functools.partial(_conv_matmul_kernel, has_bias=has_bias,
                             emit_stats=emit_stats, fuse_lrelu=fuse_lrelu, tk=tk)
    results = pl.pallas_call(
        kern,
        out_shape=tuple(out_shape),
        grid_spec=pltpu.PrefetchScalarGridSpec(
            num_scalar_prefetch=0,
            grid=(nj, ni, nk),
            in_specs=in_specs,
            out_specs=tuple(out_specs),
            scratch_shapes=[pltpu.VMEM((tm, tn), jnp.float32)]),
        compiler_params=pltpu.CompilerParams(
            dimension_semantics=("parallel", "parallel", "arbitrary"),
            vmem_limit_bytes=VMEM_LIMIT),
        cost_estimate=cost,
    )(*inputs)
    return results if emit_stats else results[0]


# ----------------------------------------------------------------------------
# Kernel 2: tiled BatchNorm-apply (folded scale/shift) + LeakyReLU.
#   bf16 in / bf16 out, f32 math; 512-1024 row tiles (pure elementwise).
# ----------------------------------------------------------------------------
def _bn_apply_lrelu_kernel(x_ref, scale_ref, shift_ref, o_ref):
    y = x_ref[...].astype(jnp.float32) * scale_ref[...] + shift_ref[...]
    o_ref[...] = jnp.where(y >= 0, y, NEG_SLOPE * y).astype(o_ref.dtype)


def bn_apply_lrelu_pallas(x, scale, shift, tm, out_dtype):
    M_pad, C_pad = x.shape
    cost = pl.CostEstimate(
        flops=4 * M_pad * C_pad, transcendentals=0,
        bytes_accessed=M_pad * C_pad * (x.dtype.itemsize + jnp.dtype(out_dtype).itemsize))
    return pl.pallas_call(
        _bn_apply_lrelu_kernel,
        out_shape=jax.ShapeDtypeStruct((M_pad, C_pad), out_dtype),
        grid=(M_pad // tm,),
        in_specs=[pl.BlockSpec((tm, C_pad), lambda i: (i, 0)),
                  pl.BlockSpec((1, C_pad), lambda i: (0, 0)),
                  pl.BlockSpec((1, C_pad), lambda i: (0, 0))],
        out_specs=pl.BlockSpec((tm, C_pad), lambda i: (i, 0)),
        compiler_params=pltpu.CompilerParams(
            dimension_semantics=("parallel",), vmem_limit_bytes=VMEM_LIMIT),
        cost_estimate=cost,
    )(x, scale, shift)


# ----------------------------------------------------------------------------
# Conv layer = bf16 im2col (XLA glue) + tiled Pallas matmul (+ BN apply)
# ----------------------------------------------------------------------------
def _im2col(x_nhwc, k, stride, pad):
    """x_nhwc bf16 with C already padded to a multiple of 8 -> (M, 16*C) bf16."""
    N, H, W, C = x_nhwc.shape
    xp = jnp.pad(x_nhwc, ((0, 0), (pad, pad), (pad, pad), (0, 0)))
    OH = (H + 2 * pad - k) // stride + 1
    OW = (W + 2 * pad - k) // stride + 1
    cols = []
    for kh in range(k):
        for kw in range(k):
            cols.append(xp[:, kh:kh + stride * OH:stride,
                           kw:kw + stride * OW:stride, :])        # (N,OH,OW,C)
    patches = jnp.stack(cols, axis=3)                             # (N,OH,OW,K*K,C)
    return patches.reshape(N * OH * OW, k * k * C), N, OH, OW


def conv_layer(x_nhwc, layer, *, fuse_lrelu, out_dtype):
    """conv (+bias) [+BatchNorm] [+LeakyReLU]; BatchNorm active iff gamma packed."""
    ksz, stride, pad = layer["k"], layer["stride"], 1
    OC, ICp = layer["oc"], layer["icp"]
    OC_pad = layer["w_mat"].shape[1]

    N, H, W, C = x_nhwc.shape
    if C < ICp:                                  # channel pad -> K multiple of 128
        x_nhwc = jnp.pad(x_nhwc, ((0, 0), (0, 0), (0, 0), (0, ICp - C)))
    x_nhwc = x_nhwc.astype(jnp.bfloat16)

    patches, N, OH, OW = _im2col(x_nhwc, ksz, stride, pad)         # (M, 16*ICp) bf16
    M, K = patches.shape

    tm = min(512, _round_up(M, 16))
    M_pad = _round_up(M, tm)
    if M_pad > M:
        patches = jnp.pad(patches, ((0, M_pad - M), (0, 0)))

    use_bn = "gamma" in layer
    bias = layer.get("bias")
    out = conv_matmul_pallas(patches, layer["w_mat"], bias,
                             emit_stats=use_bn,
                             fuse_lrelu=(fuse_lrelu and not use_bn),
                             tm=tm, out_dtype=out_dtype)

    if use_bn:
        conv, csum_p, cssq_p = out
        # Per-i partial sums are replicated across the 8 sublane rows of each
        # block; take one row per block and reduce over i (tiny).  Padded rows
        # of the conv are exactly zero (zero patches, no bias), so dividing by
        # the true M gives PyTorch's training-mode biased batch statistics.
        csum = jnp.sum(csum_p[::8], axis=0, keepdims=True)         # (1, OC_pad) f32
        cssq = jnp.sum(cssq_p[::8], axis=0, keepdims=True)
        mean = csum / M
        var = jnp.maximum(cssq / M - mean * mean, 0.0)
        scale = layer["gamma"] * jax.lax.rsqrt(var + EPS)
        shift = layer["beta"] - mean * scale
        bn_tm = _pick_tile(M_pad, 1024, 16)
        act = bn_apply_lrelu_pallas(conv, scale, shift, bn_tm, out_dtype)
    else:
        act = out

    return act[:M, :OC].reshape(N, OH, OW, OC)


# ----------------------------------------------------------------------------
# Parameters: raw (PyTorch-layout) init + one-time packing for the TPU kernels.
# ----------------------------------------------------------------------------
def init_params(key, input_nc, ndf, n_layers=3):
    params = []
    keys = jax.random.split(key, 16)
    ki = 0

    def conv_w(k, oc, ic):
        return jax.random.normal(k, (oc, ic, 4, 4), jnp.float32) * 0.05

    # layer 0: conv with bias, lrelu
    w = conv_w(keys[ki], ndf, input_nc); ki += 1
    b = jax.random.normal(keys[ki], (ndf,), jnp.float32) * 0.01; ki += 1
    params.append(dict(kind="conv_lrelu", w=w, b=b, stride=2))

    nf_mult = 1
    for n in range(1, n_layers):
        nf_prev, nf_mult = nf_mult, min(2 ** n, 8)
        w = conv_w(keys[ki], ndf * nf_mult, ndf * nf_prev); ki += 1
        gamma = jnp.ones((ndf * nf_mult,), jnp.float32)
        beta = jnp.zeros((ndf * nf_mult,), jnp.float32)
        params.append(dict(kind="conv_bn_lrelu", w=w, gamma=gamma, beta=beta, stride=2))

    nf_prev, nf_mult = nf_mult, min(2 ** n_layers, 8)
    w = conv_w(keys[ki], ndf * nf_mult, ndf * nf_prev); ki += 1
    gamma = jnp.ones((ndf * nf_mult,), jnp.float32)
    beta = jnp.zeros((ndf * nf_mult,), jnp.float32)
    params.append(dict(kind="conv_bn_lrelu", w=w, gamma=gamma, beta=beta, stride=1))

    # final conv: 1 output channel, bias, no activation
    w = conv_w(keys[ki], 1, ndf * nf_mult); ki += 1
    b = jax.random.normal(keys[ki], (1,), jnp.float32) * 0.01; ki += 1
    params.append(dict(kind="conv", w=w, b=b, stride=1))
    return params


def prepack_params(params):
    """One-time weight packing: (OC,IC,4,4) -> (16*ICp, OC_pad) bf16 matmul layout."""
    packed = []
    for p in params:
        w = p["w"]
        OC, IC, KH, KW = w.shape
        ICp = _round_up(IC, 8)               # -> K = KH*KW*ICp is a multiple of 128
        OCp = _round_up(OC, 128)
        wm = jnp.transpose(w, (2, 3, 1, 0))  # (KH,KW,IC,OC)
        wm = jnp.pad(wm, ((0, 0), (0, 0), (0, ICp - IC), (0, OCp - OC)))
        wm = wm.reshape(KH * KW * ICp, OCp).astype(jnp.bfloat16)
        entry = dict(kind=p["kind"], w_mat=wm, oc=OC, icp=ICp, k=KH, stride=p["stride"])
        if "b" in p:
            entry["bias"] = jnp.pad(p["b"].astype(jnp.float32),
                                    (0, OCp - OC)).reshape(1, OCp)
        if "gamma" in p:
            entry["gamma"] = jnp.pad(p["gamma"].astype(jnp.float32),
                                     (0, OCp - OC)).reshape(1, OCp)
            entry["beta"] = jnp.pad(p["beta"].astype(jnp.float32),
                                    (0, OCp - OC)).reshape(1, OCp)
        packed.append(entry)
    return packed


# ----------------------------------------------------------------------------
# Model forward
# ----------------------------------------------------------------------------
def nlayer_discriminator_forward(packed, x_nchw):
    # External NCHW (PyTorch) -> internal NHWC bf16 pipeline; final logits f32.
    x = jnp.transpose(x_nchw, (0, 2, 3, 1)).astype(jnp.bfloat16)
    n_total = len(packed)
    for li, p in enumerate(packed):
        last = li == n_total - 1
        out_dtype = jnp.float32 if last else jnp.bfloat16
        fuse_lrelu = not last                      # every layer but the final conv
        x = conv_layer(x, p, fuse_lrelu=fuse_lrelu, out_dtype=out_dtype)
    return jnp.transpose(x, (0, 3, 1, 2))


if __name__ == "__main__":
    key = jax.random.PRNGKey(0)
    k_params, k_input = jax.random.split(key)

    # small shapes: batch=2, input_nc=3, ndf=8, spatial=32 so every conv has a
    # valid >=1 output size: 32 -> 16 -> 8 -> 4 -> 3 -> 2
    input_nc, ndf, n_layers = 3, 8, 3
    x = jax.random.normal(k_input, (2, input_nc, 32, 32), jnp.float32)

    params = init_params(k_params, input_nc, ndf, n_layers)
    packed = prepack_params(params)          # weight packing done once, outside forward
    fwd = jax.jit(lambda inp: nlayer_discriminator_forward(packed, inp))
    out = jax.block_until_ready(fwd(x))

    assert out.shape == (2, 1, 2, 2), out.shape
    assert bool(jnp.all(jnp.isfinite(out)))
    print("KERNEL_OK")
</pallas_src>

<mosaic_0001>
module attributes {stable_mosaic.version = 11 : i64} {
  func.func @_conv_matmul_kernel(%arg0: i32, %arg1: i32, %arg2: i32, %arg3: memref<512x128xbf16, #tpu.memory_space<vmem>>, %arg4: memref<128x128xbf16, #tpu.memory_space<vmem>>, %arg5: memref<1x128xf32, #tpu.memory_space<vmem>>, %arg6: memref<512x128xbf16, #tpu.memory_space<vmem>>, %arg7: memref<512x128xf32, #tpu.memory_space<vmem>>) attributes {dimension_semantics = [#tpu.dimension_semantics<parallel>, #tpu.dimension_semantics<parallel>, #tpu.dimension_semantics<arbitrary>], iteration_bounds = array<i64: 1, 1, 1>, scalar_prefetch = 0 : i64, scratch_operands = 1 : i64, tpu.core_type = #tpu.core_type<tc>, window_params = [{transform_indices = @transform_0, window_bounds = array<i64: 512, 128>}, {transform_indices = @transform_1, window_bounds = array<i64: 128, 128>}, {transform_indices = @transform_2, window_bounds = array<i64: 1, 128>}, {transform_indices = @transform_3, window_bounds = array<i64: 512, 128>}]} {
    %c0_i32 = arith.constant 0 : i32
    %0 = arith.cmpi eq, %arg2, %c0_i32 : i32
    %1 = arith.extui %0 : i1 to i32
    %c0_i32_0 = arith.constant 0 : i32
    %2 = arith.cmpi ne, %1, %c0_i32_0 : i32
    scf.if %2 {
      %cst_9 = arith.constant 0.000000e+00 : f32
      %15 = vector.broadcast %cst_9 : f32 to vector<512x128xf32>
      %c0_10 = arith.constant 0 : index
      %c0_11 = arith.constant 0 : index
      %16 = vector.load %arg7[%c0_10, %c0_11] : memref<512x128xf32, #tpu.memory_space<vmem>>, vector<512x128xf32>
      tpu.vector_store %arg7[%c0_10, %c0_11], %15 {strides = array<i32>} : memref<512x128xf32, #tpu.memory_space<vmem>>, vector<512x128xf32>,
    } else {
    }
    %c128_i32 = arith.constant 128 : i32
    %3 = arith.muli %arg2, %c128_i32 : i32
    %4 = tpu.assume_multiple %3, 128 : i32
    %c0 = arith.constant 0 : index
    %c0_1 = arith.constant 0 : index
    %5 = vector.load %arg7[%c0, %c0_1] : memref<512x128xf32, #tpu.memory_space<vmem>>, vector<512x128xf32>
    %c0_2 = arith.constant 0 : index
    %c0_3 = arith.constant 0 : index
    %6 = vector.load %arg3[%c0_2, %c0_3] : memref<512x128xbf16, #tpu.memory_space<vmem>>, vector<512x128xbf16>
    %7 = arith.index_cast %4 : i32 to index
    %c0_4 = arith.constant 0 : index
    %8 = vector.load %arg4[%7, %c0_4] : memref<128x128xbf16, #tpu.memory_space<vmem>>, vector<128x128xbf16>
    %cst = arith.constant dense<0.000000e+00> : vector<512x128xf32>
    %9 = tpu.matmul %6, %8, %cst {dimension_numbers = #tpu.dot_dimension_numbers<[1], [0], [0], [1], [0, 0, 1, 1], [], []>} : vector<512x128xbf16>, vector<128x128xbf16>, vector<512x128xf32> -> vector<512x128xf32>
    %10 = arith.addf %5, %9 : vector<512x128xf32>
    %c0_5 = arith.constant 0 : index
    %c0_6 = arith.constant 0 : index
    %11 = vector.load %arg7[%c0_5, %c0_6] : memref<512x128xf32, #tpu.memory_space<vmem>>, vector<512x128xf32>
    tpu.vector_store %arg7[%c0_5, %c0_6], %10 {strides = array<i32>} : memref<512x128xf32, #tpu.memory_space<vmem>>, vector<512x128xf32>,
    %c0_i32_7 = arith.constant 0 : i32
    %12 = arith.cmpi eq, %arg2, %c0_i32_7 : i32
    %13 = arith.extui %12 : i1 to i32
    %c0_i32_8 = arith.constant 0 : i32
    %14 = arith.cmpi ne, %13, %c0_i32_8 : i32
    scf.if %14 {
      %c0_9 = arith.constant 0 : index
      %c0_10 = arith.constant 0 : index
      %15 = vector.load %arg7[%c0_9, %c0_10] : memref<512x128xf32, #tpu.memory_space<vmem>>, vector<512x128xf32>
      %c0_11 = arith.constant 0 : index
      %c0_12 = arith.constant 0 : index
      %16 = vector.load %arg5[%c0_11, %c0_12] : memref<1x128xf32, #tpu.memory_space<vmem>>, vector<1x128xf32>
      %17 = vector.broadcast %16 : vector<1x128xf32> to vector<512x128xf32>
      %18 = arith.addf %15, %17 : vector<512x128xf32>
      %cst_13 = arith.constant 0.000000e+00 : f32
      %19 = vector.broadcast %cst_13 : f32 to vector<512x128xf32>
      %20 = arith.cmpf oge, %18, %19 : vector<512x128xf32>
      %cst_14 = arith.constant 2.000000e-01 : f32
      %21 = vector.broadcast %cst_14 : f32 to vector<512x128xf32>
      %22 = arith.mulf %21, %18 : vector<512x128xf32>
      %23 = arith.select %20, %18, %22 : vector<512x128xi1>, vector<512x128xf32>
      %24 = arith.truncf %23 : vector<512x128xf32> to vector<512x128xbf16>
      %c0_15 = arith.constant 0 : index
      %c0_16 = arith.constant 0 : index
      %25 = vector.load %arg6[%c0_15, %c0_16] : memref<512x128xbf16, #tpu.memory_space<vmem>>, vector<512x128xbf16>
      tpu.vector_store %arg6[%c0_15, %c0_16], %24 {strides = array<i32>} : memref<512x128xbf16, #tpu.memory_space<vmem>>, vector<512x128xbf16>,
    } else {
    }
    return
  }
  func.func @transform_0(%arg0: i32, %arg1: i32, %arg2: i32) -> (i32, i32) {
    %c0_i32 = arith.constant 0 : i32
    return %arg1, %arg2 : i32, i32
  }
  func.func @transform_1(%arg0: i32, %arg1: i32, %arg2: i32) -> (i32, i32) {
    %c0_i32 = arith.constant 0 : i32
    %c0_i32_0 = arith.constant 0 : i32
    return %c0_i32, %arg0 : i32, i32
  }
  func.func @transform_2(%arg0: i32, %arg1: i32, %arg2: i32) -> (i32, i32) {
    %c0_i32 = arith.constant 0 : i32
    %c0_i32_0 = arith.constant 0 : i32
    return %c0_i32, %arg0 : i32, i32
  }
  func.func @transform_3(%arg0: i32, %arg1: i32, %arg2: i32) -> (i32, i32) {
    %c0_i32 = arith.constant 0 : i32
    return %arg1, %arg0 : i32, i32
  }
}

module attributes {stable_mosaic.version = 11 : i64} {
  func.func @_conv_matmul_kernel(%arg0: i32, %arg1: i32, %arg2: i32, %arg3: memref<128x128xbf16, #tpu.memory_space<vmem>>, %arg4: memref<128x128xbf16, #tpu.memory_space<vmem>>, %arg5: memref<128x128xbf16, #tpu.memory_space<vmem>>, %arg6: memref<8x128xf32, #tpu.memory_space<vmem>>, %arg7: memref<8x128xf32, #tpu.memory_space<vmem>>, %arg8: memref<128x128xf32, #tpu.memory_space<vmem>>) attributes {dimension_semantics = [#tpu.dimension_semantics<parallel>, #tpu.dimension_semantics<parallel>, #tpu.dimension_semantics<arbitrary>], iteration_bounds = array<i64: 1, 1, 1>, scalar_prefetch = 0 : i64, scratch_operands = 1 : i64, tpu.core_type = #tpu.core_type<tc>, window_params = [{transform_indices = @transform_0, window_bounds = array<i64: 128, 128>}, {transform_indices = @transform_1, window_bounds = array<i64: 128, 128>}, {transform_indices = @transform_2, window_bounds = array<i64: 128, 128>}, {transform_indices = @transform_3, window_bounds = array<i64: 8, 128>}, {transform_indices = @transform_4, window_bounds = array<i64: 8, 128>}]} {
    %c0_i32 = arith.constant 0 : i32
    %0 = arith.cmpi eq, %arg2, %c0_i32 : i32
    %1 = arith.extui %0 : i1 to i32
    %c0_i32_0 = arith.constant 0 : i32
    %2 = arith.cmpi ne, %1, %c0_i32_0 : i32
    scf.if %2 {
      %cst_9 = arith.constant 0.000000e+00 : f32
      %15 = vector.broadcast %cst_9 : f32 to vector<128x128xf32>
      %c0_10 = arith.constant 0 : index
      %c0_11 = arith.constant 0 : index
      %16 = vector.load %arg8[%c0_10, %c0_11] : memref<128x128xf32, #tpu.memory_space<vmem>>, vector<128x128xf32>
      tpu.vector_store %arg8[%c0_10, %c0_11], %15 {strides = array<i32>} : memref<128x128xf32, #tpu.memory_space<vmem>>, vector<128x128xf32>,
    } else {
    }
    %c128_i32 = arith.constant 128 : i32
    %3 = arith.muli %arg2, %c128_i32 : i32
    %4 = tpu.assume_multiple %3, 128 : i32
    %c0 = arith.constant 0 : index
    %c0_1 = arith.constant 0 : index
    %5 = vector.load %arg8[%c0, %c0_1] : memref<128x128xf32, #tpu.memory_space<vmem>>, vector<128x128xf32>
    %c0_2 = arith.constant 0 : index
    %c0_3 = arith.constant 0 : index
    %6 = vector.load %arg3[%c0_2, %c0_3] : memref<128x128xbf16, #tpu.memory_space<vmem>>, vector<128x128xbf16>
    %7 = arith.index_cast %4 : i32 to index
    %c0_4 = arith.constant 0 : index
    %8 = vector.load %arg4[%7, %c0_4] : memref<128x128xbf16, #tpu.memory_space<vmem>>, vector<128x128xbf16>
    %cst = arith.constant dense<0.000000e+00> : vector<128x128xf32>
    %9 = tpu.matmul %6, %8, %cst {dimension_numbers = #tpu.dot_dimension_numbers<[1], [0], [0], [1], [0, 0, 1, 1], [], []>} : vector<128x128xbf16>, vector<128x128xbf16>, vector<128x128xf32> -> vector<128x128xf32>
    %10 = arith.addf %5, %9 : vector<128x128xf32>
    %c0_5 = arith.constant 0 : index
    %c0_6 = arith.constant 0 : index
    %11 = vector.load %arg8[%c0_5, %c0_6] : memref<128x128xf32, #tpu.memory_space<vmem>>, vector<128x128xf32>
    tpu.vector_store %arg8[%c0_5, %c0_6], %10 {strides = array<i32>} : memref<128x128xf32, #tpu.memory_space<vmem>>, vector<128x128xf32>,
    %c0_i32_7 = arith.constant 0 : i32
    %12 = arith.cmpi eq, %arg2, %c0_i32_7 : i32
    %13 = arith.extui %12 : i1 to i32
    %c0_i32_8 = arith.constant 0 : i32
    %14 = arith.cmpi ne, %13, %c0_i32_8 : i32
    scf.if %14 {
      %c0_9 = arith.constant 0 : index
      %c0_10 = arith.constant 0 : index
      %15 = vector.load %arg8[%c0_9, %c0_10] : memref<128x128xf32, #tpu.memory_space<vmem>>, vector<128x128xf32>
      %16 = arith.truncf %15 : vector<128x128xf32> to vector<128x128xbf16>
      %c0_11 = arith.constant 0 : index
      %c0_12 = arith.constant 0 : index
      %17 = vector.load %arg5[%c0_11, %c0_12] : memref<128x128xbf16, #tpu.memory_space<vmem>>, vector<128x128xbf16>
      tpu.vector_store %arg5[%c0_11, %c0_12], %16 {strides = array<i32>} : memref<128x128xbf16, #tpu.memory_space<vmem>>, vector<128x128xbf16>,
      %cst_13 = arith.constant dense<0.000000e+00> : vector<128xf32>
      %18 = vector.multi_reduction <add>, %15, %cst_13 [0] : vector<128x128xf32> to vector<128xf32>
      %19 = vector.shape_cast %18 : vector<128xf32> to vector<1x128xf32>
      %20 = arith.mulf %15, %15 : vector<128x128xf32>
      %cst_14 = arith.constant dense<0.000000e+00> : vector<128xf32>
      %21 = vector.multi_reduction <add>, %20, %cst_14 [0] : vector<128x128xf32> to vector<128xf32>
      %22 = vector.shape_cast %21 : vector<128xf32> to vector<1x128xf32>
      %23 = vector.shape_cast %19 : vector<1x128xf32> to vector<1x128xf32>
      %24 = vector.broadcast %23 : vector<1x128xf32> to vector<8x128xf32>
      %c0_15 = arith.constant 0 : index
      %c0_16 = arith.constant 0 : index
      %25 = vector.load %arg6[%c0_15, %c0_16] : memref<8x128xf32, #tpu.memory_space<vmem>>, vector<8x128xf32>
      tpu.vector_store %arg6[%c0_15, %c0_16], %24 {strides = array<i32>} : memref<8x128xf32, #tpu.memory_space<vmem>>, vector<8x128xf32>,
      %26 = vector.shape_cast %22 : vector<1x128xf32> to vector<1x128xf32>
      %27 = vector.broadcast %26 : vector<1x128xf32> to vector<8x128xf32>
      %c0_17 = arith.constant 0 : index
      %c0_18 = arith.constant 0 : index
      %28 = vector.load %arg7[%c0_17, %c0_18] : memref<8x128xf32, #tpu.memory_space<vmem>>, vector<8x128xf32>
      tpu.vector_store %arg7[%c0_17, %c0_18], %27 {strides = array<i32>} : memref<8x128xf32, #tpu.memory_space<vmem>>, vector<8x128xf32>,
    } else {
    }
    return
  }
  func.func @transform_0(%arg0: i32, %arg1: i32, %arg2: i32) -> (i32, i32) {
    %c0_i32 = arith.constant 0 : i32
    return %arg1, %arg2 : i32, i32
  }
  func.func @transform_1(%arg0: i32, %arg1: i32, %arg2: i32) -> (i32, i32) {
    %c0_i32 = arith.constant 0 : i32
    %c0_i32_0 = arith.constant 0 : i32
    return %c0_i32, %arg0 : i32, i32
  }
  func.func @transform_2(%arg0: i32, %arg1: i32, %arg2: i32) -> (i32, i32) {
    %c0_i32 = arith.constant 0 : i32
    return %arg1, %arg0 : i32, i32
  }
  func.func @transform_3(%arg0: i32, %arg1: i32, %arg2: i32) -> (i32, i32) {
    %c0_i32 = arith.constant 0 : i32
    return %arg1, %arg0 : i32, i32
  }
  func.func @transform_4(%arg0: i32, %arg1: i32, %arg2: i32) -> (i32, i32) {
    %c0_i32 = arith.constant 0 : i32
    return %arg1, %arg0 : i32, i32
  }
}

module attributes {stable_mosaic.version = 11 : i64} {
  func.func @_bn_apply_lrelu_kernel(%arg0: i32, %arg1: memref<128x128xbf16, #tpu.memory_space<vmem>>, %arg2: memref<1x128xf32, #tpu.memory_space<vmem>>, %arg3: memref<1x128xf32, #tpu.memory_space<vmem>>, %arg4: memref<128x128xbf16, #tpu.memory_space<vmem>>) attributes {dimension_semantics = [#tpu.dimension_semantics<parallel>], iteration_bounds = array<i64: 1>, scalar_prefetch = 0 : i64, scratch_operands = 0 : i64, tpu.core_type = #tpu.core_type<tc>, window_params = [{transform_indices = @transform_0, window_bounds = array<i64: 128, 128>}, {pipeline_mode = #tpu.pipeline_mode<synchronous>, transform_indices = @transform_1, window_bounds = array<i64: 1, 128>}, {pipeline_mode = #tpu.pipeline_mode<synchronous>, transform_indices = @transform_2, window_bounds = array<i64: 1, 128>}, {transform_indices = @transform_3, window_bounds = array<i64: 128, 128>}]} {
    %c0 = arith.constant 0 : index
    %c0_0 = arith.constant 0 : index
    %0 = vector.load %arg1[%c0, %c0_0] : memref<128x128xbf16, #tpu.memory_space<vmem>>, vector<128x128xbf16>
    %1 = arith.extf %0 : vector<128x128xbf16> to vector<128x128xf32>
    %c0_1 = arith.constant 0 : index
    %c0_2 = arith.constant 0 : index
    %2 = vector.load %arg2[%c0_1, %c0_2] : memref<1x128xf32, #tpu.memory_space<vmem>>, vector<1x128xf32>
    %3 = vector.broadcast %2 : vector<1x128xf32> to vector<128x128xf32>
    %4 = arith.mulf %1, %3 : vector<128x128xf32>
    %c0_3 = arith.constant 0 : index
    %c0_4 = arith.constant 0 : index
    %5 = vector.load %arg3[%c0_3, %c0_4] : memref<1x128xf32, #tpu.memory_space<vmem>>, vector<1x128xf32>
    %6 = vector.broadcast %5 : vector<1x128xf32> to vector<128x128xf32>
    %7 = arith.addf %4, %6 : vector<128x128xf32>
    %cst = arith.constant 0.000000e+00 : f32
    %8 = vector.broadcast %cst : f32 to vector<128x128xf32>
    %9 = arith.cmpf oge, %7, %8 : vector<128x128xf32>
    %cst_5 = arith.constant 2.000000e-01 : f32
    %10 = vector.broadcast %cst_5 : f32 to vector<128x128xf32>
    %11 = arith.mulf %10, %7 : vector<128x128xf32>
    %12 = arith.select %9, %7, %11 : vector<128x128xi1>, vector<128x128xf32>
    %13 = arith.truncf %12 : vector<128x128xf32> to vector<128x128xbf16>
    %c0_6 = arith.constant 0 : index
    %c0_7 = arith.constant 0 : index
    %14 = vector.load %arg4[%c0_6, %c0_7] : memref<128x128xbf16, #tpu.memory_space<vmem>>, vector<128x128xbf16>
    tpu.vector_store %arg4[%c0_6, %c0_7], %13 {strides = array<i32>} : memref<128x128xbf16, #tpu.memory_space<vmem>>, vector<128x128xbf16>,
    return
  }
  func.func @transform_0(%arg0: i32) -> (i32, i32) {
    %c0_i32 = arith.constant 0 : i32
    %c0_i32_0 = arith.constant 0 : i32
    return %arg0, %c0_i32 : i32, i32
  }
  func.func @transform_1(%arg0: i32) -> (i32, i32) {
    %c0_i32 = arith.constant 0 : i32
    %c0_i32_0 = arith.constant 0 : i32
    %c0_i32_1 = arith.constant 0 : i32
    return %c0_i32, %c0_i32_0 : i32, i32
  }
  func.func @transform_2(%arg0: i32) -> (i32, i32) {
    %c0_i32 = arith.constant 0 : i32
    %c0_i32_0 = arith.constant 0 : i32
    %c0_i32_1 = arith.constant 0 : i32
    return %c0_i32, %c0_i32_0 : i32, i32
  }
  func.func @transform_3(%arg0: i32) -> (i32, i32) {
    %c0_i32 = arith.constant 0 : i32
    %c0_i32_0 = arith.constant 0 : i32
    return %arg0, %c0_i32 : i32, i32
  }
}

module attributes {stable_mosaic.version = 11 : i64} {
  func.func @_conv_matmul_kernel(%arg0: i32, %arg1: i32, %arg2: i32, %arg3: memref<32x256xbf16, #tpu.memory_space<vmem>>, %arg4: memref<256x128xbf16, #tpu.memory_space<vmem>>, %arg5: memref<32x128xbf16, #tpu.memory_space<vmem>>, %arg6: memref<8x128xf32, #tpu.memory_space<vmem>>, %arg7: memref<8x128xf32, #tpu.memory_space<vmem>>, %arg8: memref<32x128xf32, #tpu.memory_space<vmem>>) attributes {dimension_semantics = [#tpu.dimension_semantics<parallel>, #tpu.dimension_semantics<parallel>, #tpu.dimension_semantics<arbitrary>], iteration_bounds = array<i64: 1, 1, 1>, scalar_prefetch = 0 : i64, scratch_operands = 1 : i64, tpu.core_type = #tpu.core_type<tc>, window_params = [{transform_indices = @transform_0, window_bounds = array<i64: 32, 256>}, {transform_indices = @transform_1, window_bounds = array<i64: 256, 128>}, {transform_indices = @transform_2, window_bounds = array<i64: 32, 128>}, {transform_indices = @transform_3, window_bounds = array<i64: 8, 128>}, {transform_indices = @transform_4, window_bounds = array<i64: 8, 128>}]} {
    %c0_i32 = arith.constant 0 : i32
    %0 = arith.cmpi eq, %arg2, %c0_i32 : i32
    %1 = arith.extui %0 : i1 to i32
    %c0_i32_0 = arith.constant 0 : i32
    %2 = arith.cmpi ne, %1, %c0_i32_0 : i32
    scf.if %2 {
      %cst_9 = arith.constant 0.000000e+00 : f32
      %15 = vector.broadcast %cst_9 : f32 to vector<32x128xf32>
      %c0_10 = arith.constant 0 : index
      %c0_11 = arith.constant 0 : index
      %16 = vector.load %arg8[%c0_10, %c0_11] : memref<32x128xf32, #tpu.memory_space<vmem>>, vector<32x128xf32>
      tpu.vector_store %arg8[%c0_10, %c0_11], %15 {strides = array<i32>} : memref<32x128xf32, #tpu.memory_space<vmem>>, vector<32x128xf32>,
    } else {
    }
    %c256_i32 = arith.constant 256 : i32
    %3 = arith.muli %arg2, %c256_i32 : i32
    %4 = tpu.assume_multiple %3, 128 : i32
    %c0 = arith.constant 0 : index
    %c0_1 = arith.constant 0 : index
    %5 = vector.load %arg8[%c0, %c0_1] : memref<32x128xf32, #tpu.memory_space<vmem>>, vector<32x128xf32>
    %c0_2 = arith.constant 0 : index
    %c0_3 = arith.constant 0 : index
    %6 = vector.load %arg3[%c0_2, %c0_3] : memref<32x256xbf16, #tpu.memory_space<vmem>>, vector<32x256xbf16>
    %7 = arith.index_cast %4 : i32 to index
    %c0_4 = arith.constant 0 : index
    %8 = vector.load %arg4[%7, %c0_4] : memref<256x128xbf16, #tpu.memory_space<vmem>>, vector<256x128xbf16>
    %cst = arith.constant dense<0.000000e+00> : vector<32x128xf32>
    %9 = tpu.matmul %6, %8, %cst {dimension_numbers = #tpu.dot_dimension_numbers<[1], [0], [0], [1], [0, 0, 1, 1], [], []>} : vector<32x256xbf16>, vector<256x128xbf16>, vector<32x128xf32> -> vector<32x128xf32>
    %10 = arith.addf %5, %9 : vector<32x128xf32>
    %c0_5 = arith.constant 0 : index
    %c0_6 = arith.constant 0 : index
    %11 = vector.load %arg8[%c0_5, %c0_6] : memref<32x128xf32, #tpu.memory_space<vmem>>, vector<32x128xf32>
    tpu.vector_store %arg8[%c0_5, %c0_6], %10 {strides = array<i32>} : memref<32x128xf32, #tpu.memory_space<vmem>>, vector<32x128xf32>,
    %c0_i32_7 = arith.constant 0 : i32
    %12 = arith.cmpi eq, %arg2, %c0_i32_7 : i32
    %13 = arith.extui %12 : i1 to i32
    %c0_i32_8 = arith.constant 0 : i32
    %14 = arith.cmpi ne, %13, %c0_i32_8 : i32
    scf.if %14 {
      %c0_9 = arith.constant 0 : index
      %c0_10 = arith.constant 0 : index
      %15 = vector.load %arg8[%c0_9, %c0_10] : memref<32x128xf32, #tpu.memory_space<vmem>>, vector<32x128xf32>
      %16 = arith.truncf %15 : vector<32x128xf32> to vector<32x128xbf16>
      %c0_11 = arith.constant 0 : index
      %c0_12 = arith.constant 0 : index
      %17 = vector.load %arg5[%c0_11, %c0_12] : memref<32x128xbf16, #tpu.memory_space<vmem>>, vector<32x128xbf16>
      tpu.vector_store %arg5[%c0_11, %c0_12], %16 {strides = array<i32>} : memref<32x128xbf16, #tpu.memory_space<vmem>>, vector<32x128xbf16>,
      %cst_13 = arith.constant dense<0.000000e+00> : vector<128xf32>
      %18 = vector.multi_reduction <add>, %15, %cst_13 [0] : vector<32x128xf32> to vector<128xf32>
      %19 = vector.shape_cast %18 : vector<128xf32> to vector<1x128xf32>
      %20 = arith.mulf %15, %15 : vector<32x128xf32>
      %cst_14 = arith.constant dense<0.000000e+00> : vector<128xf32>
      %21 = vector.multi_reduction <add>, %20, %cst_14 [0] : vector<32x128xf32> to vector<128xf32>
      %22 = vector.shape_cast %21 : vector<128xf32> to vector<1x128xf32>
      %23 = vector.shape_cast %19 : vector<1x128xf32> to vector<1x128xf32>
      %24 = vector.broadcast %23 : vector<1x128xf32> to vector<8x128xf32>
      %c0_15 = arith.constant 0 : index
      %c0_16 = arith.constant 0 : index
      %25 = vector.load %arg6[%c0_15, %c0_16] : memref<8x128xf32, #tpu.memory_space<vmem>>, vector<8x128xf32>
      tpu.vector_store %arg6[%c0_15, %c0_16], %24 {strides = array<i32>} : memref<8x128xf32, #tpu.memory_space<vmem>>, vector<8x128xf32>,
      %26 = vector.shape_cast %22 : vector<1x128xf32> to vector<1x128xf32>
      %27 = vector.broadcast %26 : vector<1x128xf32> to vector<8x128xf32>
      %c0_17 = arith.constant 0 : index
      %c0_18 = arith.constant 0 : index
      %28 = vector.load %arg7[%c0_17, %c0_18] : memref<8x128xf32, #tpu.memory_space<vmem>>, vector<8x128xf32>
      tpu.vector_store %arg7[%c0_17, %c0_18], %27 {strides = array<i32>} : memref<8x128xf32, #tpu.memory_space<vmem>>, vector<8x128xf32>,
    } else {
    }
    return
  }
  func.func @transform_0(%arg0: i32, %arg1: i32, %arg2: i32) -> (i32, i32) {
    %c0_i32 = arith.constant 0 : i32
    return %arg1, %arg2 : i32, i32
  }
  func.func @transform_1(%arg0: i32, %arg1: i32, %arg2: i32) -> (i32, i32) {
    %c0_i32 = arith.constant 0 : i32
    %c0_i32_0 = arith.constant 0 : i32
    return %c0_i32, %arg0 : i32, i32
  }
  func.func @transform_2(%arg0: i32, %arg1: i32, %arg2: i32) -> (i32, i32) {
    %c0_i32 = arith.constant 0 : i32
    return %arg1, %arg0 : i32, i32
  }
  func.func @transform_3(%arg0: i32, %arg1: i32, %arg2: i32) -> (i32, i32) {
    %c0_i32 = arith.constant 0 : i32
    return %arg1, %arg0 : i32, i32
  }
  func.func @transform_4(%arg0: i32, %arg1: i32, %arg2: i32) -> (i32, i32) {
    %c0_i32 = arith.constant 0 : i32
    return %arg1, %arg0 : i32, i32
  }
}

module attributes {stable_mosaic.version = 11 : i64} {
  func.func @_bn_apply_lrelu_kernel(%arg0: i32, %arg1: memref<32x128xbf16, #tpu.memory_space<vmem>>, %arg2: memref<1x128xf32, #tpu.memory_space<vmem>>, %arg3: memref<1x128xf32, #tpu.memory_space<vmem>>, %arg4: memref<32x128xbf16, #tpu.memory_space<vmem>>) attributes {dimension_semantics = [#tpu.dimension_semantics<parallel>], iteration_bounds = array<i64: 1>, scalar_prefetch = 0 : i64, scratch_operands = 0 : i64, tpu.core_type = #tpu.core_type<tc>, window_params = [{transform_indices = @transform_0, window_bounds = array<i64: 32, 128>}, {pipeline_mode = #tpu.pipeline_mode<synchronous>, transform_indices = @transform_1, window_bounds = array<i64: 1, 128>}, {pipeline_mode = #tpu.pipeline_mode<synchronous>, transform_indices = @transform_2, window_bounds = array<i64: 1, 128>}, {transform_indices = @transform_3, window_bounds = array<i64: 32, 128>}]} {
    %c0 = arith.constant 0 : index
    %c0_0 = arith.constant 0 : index
    %0 = vector.load %arg1[%c0, %c0_0] : memref<32x128xbf16, #tpu.memory_space<vmem>>, vector<32x128xbf16>
    %1 = arith.extf %0 : vector<32x128xbf16> to vector<32x128xf32>
    %c0_1 = arith.constant 0 : index
    %c0_2 = arith.constant 0 : index
    %2 = vector.load %arg2[%c0_1, %c0_2] : memref<1x128xf32, #tpu.memory_space<vmem>>, vector<1x128xf32>
    %3 = vector.broadcast %2 : vector<1x128xf32> to vector<32x128xf32>
    %4 = arith.mulf %1, %3 : vector<32x128xf32>
    %c0_3 = arith.constant 0 : index
    %c0_4 = arith.constant 0 : index
    %5 = vector.load %arg3[%c0_3, %c0_4] : memref<1x128xf32, #tpu.memory_space<vmem>>, vector<1x128xf32>
    %6 = vector.broadcast %5 : vector<1x128xf32> to vector<32x128xf32>
    %7 = arith.addf %4, %6 : vector<32x128xf32>
    %cst = arith.constant 0.000000e+00 : f32
    %8 = vector.broadcast %cst : f32 to vector<32x128xf32>
    %9 = arith.cmpf oge, %7, %8 : vector<32x128xf32>
    %cst_5 = arith.constant 2.000000e-01 : f32
    %10 = vector.broadcast %cst_5 : f32 to vector<32x128xf32>
    %11 = arith.mulf %10, %7 : vector<32x128xf32>
    %12 = arith.select %9, %7, %11 : vector<32x128xi1>, vector<32x128xf32>
    %13 = arith.truncf %12 : vector<32x128xf32> to vector<32x128xbf16>
    %c0_6 = arith.constant 0 : index
    %c0_7 = arith.constant 0 : index
    %14 = vector.load %arg4[%c0_6, %c0_7] : memref<32x128xbf16, #tpu.memory_space<vmem>>, vector<32x128xbf16>
    tpu.vector_store %arg4[%c0_6, %c0_7], %13 {strides = array<i32>} : memref<32x128xbf16, #tpu.memory_space<vmem>>, vector<32x128xbf16>,
    return
  }
  func.func @transform_0(%arg0: i32) -> (i32, i32) {
    %c0_i32 = arith.constant 0 : i32
    %c0_i32_0 = arith.constant 0 : i32
    return %arg0, %c0_i32 : i32, i32
  }
  func.func @transform_1(%arg0: i32) -> (i32, i32) {
    %c0_i32 = arith.constant 0 : i32
    %c0_i32_0 = arith.constant 0 : i32
    %c0_i32_1 = arith.constant 0 : i32
    return %c0_i32, %c0_i32_0 : i32, i32
  }
  func.func @transform_2(%arg0: i32) -> (i32, i32) {
    %c0_i32 = arith.constant 0 : i32
    %c0_i32_0 = arith.constant 0 : i32
    %c0_i32_1 = arith.constant 0 : i32
    return %c0_i32, %c0_i32_0 : i32, i32
  }
  func.func @transform_3(%arg0: i32) -> (i32, i32) {
    %c0_i32 = arith.constant 0 : i32
    %c0_i32_0 = arith.constant 0 : i32
    return %arg0, %c0_i32 : i32, i32
  }
}

module attributes {stable_mosaic.version = 11 : i64} {
  func.func @_conv_matmul_kernel(%arg0: i32, %arg1: i32, %arg2: i32, %arg3: memref<32x512xbf16, #tpu.memory_space<vmem>>, %arg4: memref<512x128xbf16, #tpu.memory_space<vmem>>, %arg5: memref<32x128xbf16, #tpu.memory_space<vmem>>, %arg6: memref<8x128xf32, #tpu.memory_space<vmem>>, %arg7: memref<8x128xf32, #tpu.memory_space<vmem>>, %arg8: memref<32x128xf32, #tpu.memory_space<vmem>>) attributes {dimension_semantics = [#tpu.dimension_semantics<parallel>, #tpu.dimension_semantics<parallel>, #tpu.dimension_semantics<arbitrary>], iteration_bounds = array<i64: 1, 1, 1>, scalar_prefetch = 0 : i64, scratch_operands = 1 : i64, tpu.core_type = #tpu.core_type<tc>, window_params = [{transform_indices = @transform_0, window_bounds = array<i64: 32, 512>}, {transform_indices = @transform_1, window_bounds = array<i64: 512, 128>}, {transform_indices = @transform_2, window_bounds = array<i64: 32, 128>}, {transform_indices = @transform_3, window_bounds = array<i64: 8, 128>}, {transform_indices = @transform_4, window_bounds = array<i64: 8, 128>}]} {
    %c0_i32 = arith.constant 0 : i32
    %0 = arith.cmpi eq, %arg2, %c0_i32 : i32
    %1 = arith.extui %0 : i1 to i32
    %c0_i32_0 = arith.constant 0 : i32
    %2 = arith.cmpi ne, %1, %c0_i32_0 : i32
    scf.if %2 {
      %cst_9 = arith.constant 0.000000e+00 : f32
      %15 = vector.broadcast %cst_9 : f32 to vector<32x128xf32>
      %c0_10 = arith.constant 0 : index
      %c0_11 = arith.constant 0 : index
      %16 = vector.load %arg8[%c0_10, %c0_11] : memref<32x128xf32, #tpu.memory_space<vmem>>, vector<32x128xf32>
      tpu.vector_store %arg8[%c0_10, %c0_11], %15 {strides = array<i32>} : memref<32x128xf32, #tpu.memory_space<vmem>>, vector<32x128xf32>,
    } else {
    }
    %c512_i32 = arith.constant 512 : i32
    %3 = arith.muli %arg2, %c512_i32 : i32
    %4 = tpu.assume_multiple %3, 128 : i32
    %c0 = arith.constant 0 : index
    %c0_1 = arith.constant 0 : index
    %5 = vector.load %arg8[%c0, %c0_1] : memref<32x128xf32, #tpu.memory_space<vmem>>, vector<32x128xf32>
    %c0_2 = arith.constant 0 : index
    %c0_3 = arith.constant 0 : index
    %6 = vector.load %arg3[%c0_2, %c0_3] : memref<32x512xbf16, #tpu.memory_space<vmem>>, vector<32x512xbf16>
    %7 = arith.index_cast %4 : i32 to index
    %c0_4 = arith.constant 0 : index
    %8 = vector.load %arg4[%7, %c0_4] : memref<512x128xbf16, #tpu.memory_space<vmem>>, vector<512x128xbf16>
    %cst = arith.constant dense<0.000000e+00> : vector<32x128xf32>
    %9 = tpu.matmul %6, %8, %cst {dimension_numbers = #tpu.dot_dimension_numbers<[1], [0], [0], [1], [0, 0, 1, 1], [], []>} : vector<32x512xbf16>, vector<512x128xbf16>, vector<32x128xf32> -> vector<32x128xf32>
    %10 = arith.addf %5, %9 : vector<32x128xf32>
    %c0_5 = arith.constant 0 : index
    %c0_6 = arith.constant 0 : index
    %11 = vector.load %arg8[%c0_5, %c0_6] : memref<32x128xf32, #tpu.memory_space<vmem>>, vector<32x128xf32>
    tpu.vector_store %arg8[%c0_5, %c0_6], %10 {strides = array<i32>} : memref<32x128xf32, #tpu.memory_space<vmem>>, vector<32x128xf32>,
    %c0_i32_7 = arith.constant 0 : i32
    %12 = arith.cmpi eq, %arg2, %c0_i32_7 : i32
    %13 = arith.extui %12 : i1 to i32
    %c0_i32_8 = arith.constant 0 : i32
    %14 = arith.cmpi ne, %13, %c0_i32_8 : i32
    scf.if %14 {
      %c0_9 = arith.constant 0 : index
      %c0_10 = arith.constant 0 : index
      %15 = vector.load %arg8[%c0_9, %c0_10] : memref<32x128xf32, #tpu.memory_space<vmem>>, vector<32x128xf32>
      %16 = arith.truncf %15 : vector<32x128xf32> to vector<32x128xbf16>
      %c0_11 = arith.constant 0 : index
      %c0_12 = arith.constant 0 : index
      %17 = vector.load %arg5[%c0_11, %c0_12] : memref<32x128xbf16, #tpu.memory_space<vmem>>, vector<32x128xbf16>
      tpu.vector_store %arg5[%c0_11, %c0_12], %16 {strides = array<i32>} : memref<32x128xbf16, #tpu.memory_space<vmem>>, vector<32x128xbf16>,
      %cst_13 = arith.constant dense<0.000000e+00> : vector<128xf32>
      %18 = vector.multi_reduction <add>, %15, %cst_13 [0] : vector<32x128xf32> to vector<128xf32>
      %19 = vector.shape_cast %18 : vector<128xf32> to vector<1x128xf32>
      %20 = arith.mulf %15, %15 : vector<32x128xf32>
      %cst_14 = arith.constant dense<0.000000e+00> : vector<128xf32>
      %21 = vector.multi_reduction <add>, %20, %cst_14 [0] : vector<32x128xf32> to vector<128xf32>
      %22 = vector.shape_cast %21 : vector<128xf32> to vector<1x128xf32>
      %23 = vector.shape_cast %19 : vector<1x128xf32> to vector<1x128xf32>
      %24 = vector.broadcast %23 : vector<1x128xf32> to vector<8x128xf32>
      %c0_15 = arith.constant 0 : index
      %c0_16 = arith.constant 0 : index
      %25 = vector.load %arg6[%c0_15, %c0_16] : memref<8x128xf32, #tpu.memory_space<vmem>>, vector<8x128xf32>
      tpu.vector_store %arg6[%c0_15, %c0_16], %24 {strides = array<i32>} : memref<8x128xf32, #tpu.memory_space<vmem>>, vector<8x128xf32>,
      %26 = vector.shape_cast %22 : vector<1x128xf32> to vector<1x128xf32>
      %27 = vector.broadcast %26 : vector<1x128xf32> to vector<8x128xf32>
      %c0_17 = arith.constant 0 : index
      %c0_18 = arith.constant 0 : index
      %28 = vector.load %arg7[%c0_17, %c0_18] : memref<8x128xf32, #tpu.memory_space<vmem>>, vector<8x128xf32>
      tpu.vector_store %arg7[%c0_17, %c0_18], %27 {strides = array<i32>} : memref<8x128xf32, #tpu.memory_space<vmem>>, vector<8x128xf32>,
    } else {
    }
    return
  }
  func.func @transform_0(%arg0: i32, %arg1: i32, %arg2: i32) -> (i32, i32) {
    %c0_i32 = arith.constant 0 : i32
    return %arg1, %arg2 : i32, i32
  }
  func.func @transform_1(%arg0: i32, %arg1: i32, %arg2: i32) -> (i32, i32) {
    %c0_i32 = arith.constant 0 : i32
    %c0_i32_0 = arith.constant 0 : i32
    return %c0_i32, %arg0 : i32, i32
  }
  func.func @transform_2(%arg0: i32, %arg1: i32, %arg2: i32) -> (i32, i32) {
    %c0_i32 = arith.constant 0 : i32
    return %arg1, %arg0 : i32, i32
  }
  func.func @transform_3(%arg0: i32, %arg1: i32, %arg2: i32) -> (i32, i32) {
    %c0_i32 = arith.constant 0 : i32
    return %arg1, %arg0 : i32, i32
  }
  func.func @transform_4(%arg0: i32, %arg1: i32, %arg2: i32) -> (i32, i32) {
    %c0_i32 = arith.constant 0 : i32
    return %arg1, %arg0 : i32, i32
  }
}

module attributes {stable_mosaic.version = 11 : i64} {
  func.func @_conv_matmul_kernel(%arg0: i32, %arg1: i32, %arg2: i32, %arg3: memref<16x1024xbf16, #tpu.memory_space<vmem>>, %arg4: memref<1024x128xbf16, #tpu.memory_space<vmem>>, %arg5: memref<1x128xf32, #tpu.memory_space<vmem>>, %arg6: memref<16x128xf32, #tpu.memory_space<vmem>>, %arg7: memref<16x128xf32, #tpu.memory_space<vmem>>) attributes {dimension_semantics = [#tpu.dimension_semantics<parallel>, #tpu.dimension_semantics<parallel>, #tpu.dimension_semantics<arbitrary>], iteration_bounds = array<i64: 1, 1, 1>, scalar_prefetch = 0 : i64, scratch_operands = 1 : i64, tpu.core_type = #tpu.core_type<tc>, window_params = [{transform_indices = @transform_0, window_bounds = array<i64: 16, 1024>}, {transform_indices = @transform_1, window_bounds = array<i64: 1024, 128>}, {transform_indices = @transform_2, window_bounds = array<i64: 1, 128>}, {transform_indices = @transform_3, window_bounds = array<i64: 16, 128>}]} {
    %c0_i32 = arith.constant 0 : i32
    %0 = arith.cmpi eq, %arg2, %c0_i32 : i32
    %1 = arith.extui %0 : i1 to i32
    %c0_i32_0 = arith.constant 0 : i32
    %2 = arith.cmpi ne, %1, %c0_i32_0 : i32
    scf.if %2 {
      %cst_9 = arith.constant 0.000000e+00 : f32
      %15 = vector.broadcast %cst_9 : f32 to vector<16x128xf32>
      %c0_10 = arith.constant 0 : index
      %c0_11 = arith.constant 0 : index
      %16 = vector.load %arg7[%c0_10, %c0_11] : memref<16x128xf32, #tpu.memory_space<vmem>>, vector<16x128xf32>
      tpu.vector_store %arg7[%c0_10, %c0_11], %15 {strides = array<i32>} : memref<16x128xf32, #tpu.memory_space<vmem>>, vector<16x128xf32>,
    } else {
    }
    %c1024_i32 = arith.constant 1024 : i32
    %3 = arith.muli %arg2, %c1024_i32 : i32
    %4 = tpu.assume_multiple %3, 128 : i32
    %c0 = arith.constant 0 : index
    %c0_1 = arith.constant 0 : index
    %5 = vector.load %arg7[%c0, %c0_1] : memref<16x128xf32, #tpu.memory_space<vmem>>, vector<16x128xf32>
    %c0_2 = arith.constant 0 : index
    %c0_3 = arith.constant 0 : index
    %6 = vector.load %arg3[%c0_2, %c0_3] : memref<16x1024xbf16, #tpu.memory_space<vmem>>, vector<16x1024xbf16>
    %7 = arith.index_cast %4 : i32 to index
    %c0_4 = arith.constant 0 : index
    %8 = vector.load %arg4[%7, %c0_4] : memref<1024x128xbf16, #tpu.memory_space<vmem>>, vector<1024x128xbf16>
    %cst = arith.constant dense<0.000000e+00> : vector<16x128xf32>
    %9 = tpu.matmul %6, %8, %cst {dimension_numbers = #tpu.dot_dimension_numbers<[1], [0], [0], [1], [0, 0, 1, 1], [], []>} : vector<16x1024xbf16>, vector<1024x128xbf16>, vector<16x128xf32> -> vector<16x128xf32>
    %10 = arith.addf %5, %9 : vector<16x128xf32>
    %c0_5 = arith.constant 0 : index
    %c0_6 = arith.constant 0 : index
    %11 = vector.load %arg7[%c0_5, %c0_6] : memref<16x128xf32, #tpu.memory_space<vmem>>, vector<16x128xf32>
    tpu.vector_store %arg7[%c0_5, %c0_6], %10 {strides = array<i32>} : memref<16x128xf32, #tpu.memory_space<vmem>>, vector<16x128xf32>,
    %c0_i32_7 = arith.constant 0 : i32
    %12 = arith.cmpi eq, %arg2, %c0_i32_7 : i32
    %13 = arith.extui %12 : i1 to i32
    %c0_i32_8 = arith.constant 0 : i32
    %14 = arith.cmpi ne, %13, %c0_i32_8 : i32
    scf.if %14 {
      %c0_9 = arith.constant 0 : index
      %c0_10 = arith.constant 0 : index
      %15 = vector.load %arg7[%c0_9, %c0_10] : memref<16x128xf32, #tpu.memory_space<vmem>>, vector<16x128xf32>
      %c0_11 = arith.constant 0 : index
      %c0_12 = arith.constant 0 : index
      %16 = vector.load %arg5[%c0_11, %c0_12] : memref<1x128xf32, #tpu.memory_space<vmem>>, vector<1x128xf32>
      %17 = vector.broadcast %16 : vector<1x128xf32> to vector<16x128xf32>
      %18 = arith.addf %15, %17 : vector<16x128xf32>
      %c0_13 = arith.constant 0 : index
      %c0_14 = arith.constant 0 : index
      %19 = vector.load %arg6[%c0_13, %c0_14] : memref<16x128xf32, #tpu.memory_space<vmem>>, vector<16x128xf32>
      tpu.vector_store %arg6[%c0_13, %c0_14], %18 {strides = array<i32>} : memref<16x128xf32, #tpu.memory_space<vmem>>, vector<16x128xf32>,
    } else {
    }
    return
  }
  func.func @transform_0(%arg0: i32, %arg1: i32, %arg2: i32) -> (i32, i32) {
    %c0_i32 = arith.constant 0 : i32
    return %arg1, %arg2 : i32, i32
  }
  func.func @transform_1(%arg0: i32, %arg1: i32, %arg2: i32) -> (i32, i32) {
    %c0_i32 = arith.constant 0 : i32
    %c0_i32_0 = arith.constant 0 : i32
    return %c0_i32, %arg0 : i32, i32
  }
  func.func @transform_2(%arg0: i32, %arg1: i32, %arg2: i32) -> (i32, i32) {
    %c0_i32 = arith.constant 0 : i32
    %c0_i32_0 = arith.constant 0 : i32
    return %c0_i32, %arg0 : i32, i32
  }
  func.func @transform_3(%arg0: i32, %arg1: i32, %arg2: i32) -> (i32, i32) {
    %c0_i32 = arith.constant 0 : i32
    return %arg1, %arg0 : i32, i32
  }
}

</mosaic_0001>

<bundles_post_ra>
// kernel: _lambda_.8
= control target key start
LH: loop header
LB: loop body
LE: loop exit
PB: predicated region body
PF: predicated region fallthrough
CT: control target
= control target key end

     0   :  { %s2389_s1 = inlined_call_operand.vmem [shape: bf16[128,128], index: 1, kind: input, shape index: {}]   ;;  %s2390_s0 = inlined_call_operand.vmem [shape: bf16[512,128], index: 0, kind: input, shape index: {}]   ;;  %s2391_s2 = inlined_call_operand.vmem [shape: f32[1,128], index: 2, kind: input, shape index: {}]   ;;  %s2392_s3 = inlined_call_operand.vmem [shape: bf16[512,128], index: 3, kind: output, shape index: {}]  }
   0x1   :  { %v2041_v0 = vld [vmem:[%s2389_s1 + $0x38] sm:$0xff]   ;;  %v2042_v1 = vld [vmem:[%s2389_s1 + $0x30] sm:$0xff]   ;;  %v2043_v2 = vld [vmem:[%s2389_s1 + $0x28] sm:$0xff]  }
   0x2   :  { %1945 = vmatprep.subr.bf16.mxu0 %v2041_v0  ;;  %2025 = vmatprep.subr.bf16.mxu1 %v2041_v0  ;;  %v2044_v3 = vld [vmem:[%s2389_s1 + $0x20] sm:$0xff]   ;;  %v2045_v6 = vld [vmem:[%s2389_s1 + $0x18] sm:$0xff]   ;;  %v2046_v7 = vld [vmem:[%s2389_s1 + $0x10] sm:$0xff]  }
   0x3   :  { %1946 = vmatpush3.bf16.msra.mxu0 %v2041_v0  ;;  %2033 = vmatpush3.bf16.msra.mxu1 %v2041_v0  ;;  %v2049_v4 = vld [vmem:[%s2390_s0] sm:$0xff]   ;;  %v2047_v8 = vld [vmem:[%s2389_s1 + $0x8] sm:$0xff]   ;;  %v2053_v12 = vld [vmem:[%s2390_s0 + $0x10] sm:$0xff]  }
   0x4   :  { %1947 = vmatprep.subr.bf16.mxu0 %v2042_v1  ;;  %2026 = vmatprep.subr.bf16.mxu1 %v2042_v1  ;;  %v2050_v5 = vld [vmem:[%s2390_s0 + $0x80] sm:$0xff]   ;;  %v2051_v10 = vld [vmem:[%s2390_s0 + $0x8] sm:$0xff]   ;;  %v2054_v13 = vld [vmem:[%s2390_s0 + $0x90] sm:$0xff]  }
   0x5   :  { %1961 = vmatprep.mubr.bf16.mxu0 %v2049_v4  ;;  %1993 = vmatprep.mubr.bf16.mxu1 %v2050_v5  ;;  %v2048_v9 = vld [vmem:[%s2389_s1] sm:$0xff]   ;;  %v2052_v11 = vld [vmem:[%s2390_s0 + $0x88] sm:$0xff]   ;;  %v2055_v14 = vld [vmem:[%s2390_s0 + $0x18] sm:$0xff]  }
   0x6   :  { %v2056_v15 = vld [vmem:[%s2390_s0 + $0x98] sm:$0xff]   ;;  %v2057_v16 = vld [vmem:[%s2390_s0 + $0x20] sm:$0xff]   ;;  %v2059_v18 = vld [vmem:[%s2390_s0 + $0x28] sm:$0xff]  }
   0x7   :  { %1948 = vmatpush3.bf16.msra.mxu0 %v2042_v1  ;;  %2034 = vmatpush3.bf16.msra.mxu1 %v2042_v1  ;;  %v2058_v17 = vld [vmem:[%s2390_s0 + $0xa0] sm:$0xff]   ;;  %v2060_v19 = vld [vmem:[%s2390_s0 + $0xa8] sm:$0xff]   ;;  %v2061_v20 = vld [vmem:[%s2390_s0 + $0x30] sm:$0xff]  }
   0x8   :  { %1949 = vmatprep.subr.bf16.mxu0 %v2043_v2  ;;  %2027 = vmatprep.subr.bf16.mxu1 %v2043_v2  ;;  %v2062_v21 = vld [vmem:[%s2390_s0 + $0xb0] sm:$0xff]   ;;  %v2063_v22 = vld [vmem:[%s2390_s0 + $0x38] sm:$0xff]   ;;  %v2065_v24 = vld [vmem:[%s2390_s0 + $0x40] sm:$0xff]  }
   0x9   :  { %v2064_v23 = vld [vmem:[%s2390_s0 + $0xb8] sm:$0xff]   ;;  %v2066_v25 = vld [vmem:[%s2390_s0 + $0xc0] sm:$0xff]   ;;  %v2067_v26 = vld [vmem:[%s2390_s0 + $0x48] sm:$0xff]  }
   0xa   :  { %v2068_v27 = vld [vmem:[%s2390_s0 + $0xc8] sm:$0xff]   ;;  %v2069_v28 = vld [vmem:[%s2390_s0 + $0x50] sm:$0xff]   ;;  %v2071_v30 = vld [vmem:[%s2390_s0 + $0x58] sm:$0xff]  }
   0xb   :  { %1950 = vmatpush3.bf16.msra.mxu0 %v2043_v2  ;;  %2035 = vmatpush3.bf16.msra.mxu1 %v2043_v2  ;;  %v2070_v29 = vld [vmem:[%s2390_s0 + $0xd0] sm:$0xff]   ;;  %v2072_v31 = vld [vmem:[%s2390_s0 + $0xd8] sm:$0xff]   ;;  %v2073_v32 = vld [vmem:[%s2390_s0 + $0x60] sm:$0xff]  }
   0xc   :  { %1951 = vmatprep.subr.bf16.mxu0 %v2044_v3  ;;  %2028 = vmatprep.subr.bf16.mxu1 %v2044_v3  ;;  %v2074_v33 = vld [vmem:[%s2390_s0 + $0xe0] sm:$0xff]   ;;  %v2075_v34 = vld [vmem:[%s2390_s0 + $0x68] sm:$0xff]   ;;  %v2077_v36 = vld [vmem:[%s2390_s0 + $0x70] sm:$0xff]  }
   0xd   :  { %v2076_v35 = vld [vmem:[%s2390_s0 + $0xe8] sm:$0xff]   ;;  %v2078_v37 = vld [vmem:[%s2390_s0 + $0xf0] sm:$0xff]   ;;  %v2079_v38 = vld [vmem:[%s2390_s0 + $0x78] sm:$0xff]  }
   0xe   :  { %v2080_v39 = vld [vmem:[%s2390_s0 + $0xf8] sm:$0xff]   ;;  %v2224_v40 = vld [vmem:[%s2391_s2] ss:$0 sm:$0xff] }
   0xf   :  { %1952 = vmatpush3.bf16.msra.mxu0 %v2044_v3  ;;  %2036 = vmatpush3.bf16.msra.mxu1 %v2044_v3 }
  0x10   :  { %1953 = vmatprep.subr.bf16.mxu0 %v2045_v6  ;;  %2029 = vmatprep.subr.bf16.mxu1 %v2045_v6 }
  0x13   :  { %1954 = vmatpush3.bf16.msra.mxu0 %v2045_v6  ;;  %2037 = vmatpush3.bf16.msra.mxu1 %v2045_v6 }
  0x14   :  { %1955 = vmatprep.subr.bf16.mxu0 %v2046_v7  ;;  %2030 = vmatprep.subr.bf16.mxu1 %v2046_v7 }
  0x17   :  { %1956 = vmatpush3.bf16.msra.mxu0 %v2046_v7  ;;  %2038 = vmatpush3.bf16.msra.mxu1 %v2046_v7 }
  0x18   :  { %1957 = vmatprep.subr.bf16.mxu0 %v2047_v8  ;;  %2031 = vmatprep.subr.bf16.mxu1 %v2047_v8 }
  0x1b   :  { %1958 = vmatpush3.bf16.msra.mxu0 %v2047_v8  ;;  %2039 = vmatpush3.bf16.msra.mxu1 %v2047_v8 }
  0x1c   :  { %1959 = vmatprep.subr.bf16.mxu0 %v2048_v9  ;;  %2032 = vmatprep.subr.bf16.mxu1 %v2048_v9 }
  0x1f   :  { %1960 = vmatpush3.bf16.msra.mxu0 %v2048_v9  ;;  %2040 = vmatpush3.bf16.msra.mxu1 %v2048_v9 }
  0x22   :  { %1962 = vmatmul.mubr.bf16.vlgmr.msra.gmra.mxu0 %v2051_v10  ;;  %1994 = vmatmul.mubr.bf16.vlgmr.msra.gmra.mxu1 %v2052_v11 }
  0x23   :  { %1965 = vmatprep.mubr.bf16.mxu0 %v2053_v12  ;;  %1997 = vmatprep.mubr.bf16.mxu1 %v2054_v13 }
  0x2a   :  { %1966 = vmatmul.mubr.bf16.gmra.mxu0 %v2055_v14  ;;  %1998 = vmatmul.mubr.bf16.gmra.mxu1 %v2056_v15 }
  0x2b   :  { %1969 = vmatprep.mubr.bf16.mxu0 %v2057_v16  ;;  %2001 = vmatprep.mubr.bf16.mxu1 %v2058_v17 }
  0x32   :  { %1970 = vmatmul.mubr.bf16.gmra.mxu0 %v2059_v18  ;;  %2002 = vmatmul.mubr.bf16.gmra.mxu1 %v2060_v19 }
  0x33   :  { %1973 = vmatprep.mubr.bf16.mxu0 %v2061_v20  ;;  %2005 = vmatprep.mubr.bf16.mxu1 %v2062_v21 }
  0x3a   :  { %1974 = vmatmul.mubr.bf16.gmra.mxu0 %v2063_v22  ;;  %2006 = vmatmul.mubr.bf16.gmra.mxu1 %v2064_v23 }
  0x3b   :  { %1977 = vmatprep.mubr.bf16.mxu0 %v2065_v24  ;;  %2009 = vmatprep.mubr.bf16.mxu1 %v2066_v25 }
  0x42   :  { %1978 = vmatmul.mubr.bf16.gmra.mxu0 %v2067_v26  ;;  %2010 = vmatmul.mubr.bf16.gmra.mxu1 %v2068_v27 }
  0x43   :  { %1981 = vmatprep.mubr.bf16.mxu0 %v2069_v28  ;;  %2013 = vmatprep.mubr.bf16.mxu1 %v2070_v29 }
  0x4a   :  { %1982 = vmatmul.mubr.bf16.gmra.mxu0 %v2071_v30  ;;  %2014 = vmatmul.mubr.bf16.gmra.mxu1 %v2072_v31 }
  0x4b   :  { %1985 = vmatprep.mubr.bf16.mxu0 %v2073_v32  ;;  %2017 = vmatprep.mubr.bf16.mxu1 %v2074_v33 }
  0x52   :  { %1986 = vmatmul.mubr.bf16.gmra.mxu0 %v2075_v34  ;;  %2018 = vmatmul.mubr.bf16.gmra.mxu1 %v2076_v35 }
  0x53   :  { %1989 = vmatprep.mubr.bf16.mxu0 %v2077_v36  ;;  %2021 = vmatprep.mubr.bf16.mxu1 %v2078_v37 }
  0x5a   :  { %1990 = vmatmul.mubr.bf16.gmra.mxu0 %v2079_v38  ;;  %2022 = vmatmul.mubr.bf16.gmra.mxu1 %v2080_v39 }
  0xe2   :  { %v1963_v41 = vpop.f32.mrf.mxu0  ;;  %v1995_v42 = vpop.f32.mrf.mxu1 }
  0xe3   :  { %v965_v43 = vadd.f32 %v1963_v41, %v2224_v40  ;;  %v997_v44 = vadd.f32 %v1995_v42, %v2224_v40 }
  0xe4   :  { %v506_v45 = vpop.f32.mrf.mxu0  ;;  %v634_v46 = vpop.f32.mrf.mxu1 }
  0xe5   :  { %vm1029_vm0 = vcmp.ge.f32.partialorder %v965_v43, 0.0  ;;  %v1093_v47 = vmul.f32 0.2, %v965_v43  ;;  %vm1061_vm1 = vcmp.ge.f32.partialorder %v997_v44, 0.0  ;;  %v1125_v48 = vmul.f32 0.2, %v997_v44 }
  0xe6   :  { %v963_v49 = vadd.f32 %v2224_v40, %v506_v45  ;;  %v995_v50 = vadd.f32 %v2224_v40, %v634_v46  ;;  %v1964_v51 = vpop.f32.mrf.mxu0  ;;  %v1996_v52 = vpop.f32.mrf.mxu1 }
  0xe7   :  { %v1157_v53 = vsel %vm1029_vm0, %v965_v43, %v1093_v47  ;;  %v966_v54 = vadd.f32 %v1964_v51, %v2224_v40  ;;  %v998_v55 = vadd.f32 %v1996_v52, %v2224_v40  ;;  %v1189_v56 = vsel %vm1061_vm1, %v997_v44, %v1125_v48 }
  0xe8   :  { %vm1027_vm2 = vcmp.ge.f32.partialorder %v963_v49, 0.0  ;;  %v1091_v57 = vmul.f32 0.2, %v963_v49  ;;  %vm1059_vm3 = vcmp.ge.f32.partialorder %v995_v50, 0.0  ;;  %v509_v58 = vpop.f32.mrf.mxu0  ;;  %v637_v59 = vpop.f32.mrf.mxu1  ;;  %v1123_v63 = vmul.f32 0.2, %v995_v50 }
  0xe9   :  { %vm1030_vm4 = vcmp.ge.f32.partialorder %v966_v54, 0.0  ;;  %v1094_v60 = vmul.f32 0.2, %v966_v54  ;;  %vm1062_vm5 = vcmp.ge.f32.partialorder %v998_v55, 0.0  ;;  %v1126_v61 = vmul.f32 0.2, %v998_v55 }
  0xea   :  { %v1155_v62 = vsel %vm1027_vm2, %v963_v49, %v1091_v57  ;;  %v964_v0 = vadd.f32 %v2224_v40, %v509_v58  ;;  %v996_v1 = vadd.f32 %v2224_v40, %v637_v59  ;;  %v1967_v2 = vpop.f32.mrf.mxu0  ;;  %v1999_v3 = vpop.f32.mrf.mxu1  ;;  %v1187_v15 = vsel %vm1059_vm3, %v995_v50, %v1123_v63 }
  0xeb   :  { %v1158_v4 = vsel %vm1030_vm4, %v966_v54, %v1094_v60  ;;  %v1190_v5 = vsel %vm1062_vm5, %v998_v55, %v1126_v61  ;;  %v969_v6 = vadd.f32 %v1967_v2, %v2224_v40  ;;  %v1001_v7 = vadd.f32 %v1999_v3, %v2224_v40 }
  0xec   :  { %v1722_v8 = vpack.c.bf16 %v1158_v4, %v1157_v53  ;;  %v1802_v9 = vpack.c.bf16 %v1190_v5, %v1189_v56  ;;  %vm1028_vm6 = vcmp.ge.f32.partialorder %v964_v0, 0.0  ;;  %v1092_v10 = vmul.f32 0.2, %v964_v0  ;;  %v522_v11 = vpop.f32.mrf.mxu0  ;;  %v650_v12 = vpop.f32.mrf.mxu1 }
  0xed   :  { %vm1060_vm7 = vcmp.ge.f32.partialorder %v996_v1, 0.0  ;;  %v1124_v13 = vmul.f32 0.2, %v996_v1  ;;  %vm1033_vm8 = vcmp.ge.f32.partialorder %v969_v6, 0.0  ;;  %v1097_v14 = vmul.f32 0.2, %v969_v6 }
  0xee   :  { %1874 = vst [vmem:[%s2392_s3 + $0x8] sm:$0xff] %v1722_v8   ;;  %1890 = vst [vmem:[%s2392_s3 + $0x88] sm:$0xff] %v1802_v9   ;;  %v1156_v16 = vsel %vm1028_vm6, %v964_v0, %v1092_v10  ;;  %v1129_v17 = vmul.f32 0.2, %v1001_v7  ;;  %v967_v18 = vadd.f32 %v2224_v40, %v522_v11  ;;  %v1968_v19 = vpop.f32.mrf.mxu0  ;;  %v2000_v20 = vpop.f32.mrf.mxu1  ;;  %vm1065_vm9 = vcmp.ge.f32.partialorder %v1001_v7, 0.0 }
  0xef   :  { %v1717_v21 = vpack.c.bf16 %v1156_v16, %v1155_v62  ;;  %v1188_v22 = vsel %vm1060_vm7, %v996_v1, %v1124_v13  ;;  %v999_v23 = vadd.f32 %v2224_v40, %v650_v12  ;;  %v1161_v25 = vsel %vm1033_vm8, %v969_v6, %v1097_v14 }
  0xf0   :  { %v1797_v24 = vpack.c.bf16 %v1188_v22, %v1187_v15  ;;  %vm1031_vm10 = vcmp.ge.f32.partialorder %v967_v18, 0.0  ;;  %v1095_v26 = vmul.f32 0.2, %v967_v18  ;;  %v525_v27 = vpop.f32.mrf.mxu0  ;;  %v653_v28 = vpop.f32.mrf.mxu1  ;;  %v970_v30 = vadd.f32 %v1968_v19, %v2224_v40 }
  0xf1   :  { %1718 = vst [vmem:[%s2392_s3] sm:$0xff] %v1717_v21   ;;  %vm1063_vm11 = vcmp.ge.f32.partialorder %v999_v23, 0.0  ;;  %v1127_v29 = vmul.f32 0.2, %v999_v23  ;;  %v1002_v31 = vadd.f32 %v2000_v20, %v2224_v40  ;;  %v1193_v32 = vsel %vm1065_vm9, %v1001_v7, %v1129_v17 }
  0xf2   :  { %1889 = vst [vmem:[%s2392_s3 + $0x80] sm:$0xff] %v1797_v24   ;;  %v1159_v33 = vsel %vm1031_vm10, %v967_v18, %v1095_v26  ;;  %v968_v34 = vadd.f32 %v2224_v40, %v525_v27  ;;  %v1000_v35 = vadd.f32 %v2224_v40, %v653_v28  ;;  %v1971_v36 = vpop.f32.mrf.mxu0  ;;  %v2003_v37 = vpop.f32.mrf.mxu1  ;;  %vm1034_vm12 = vcmp.ge.f32.partialorder %v970_v30, 0.0 }
  0xf3   :  { %v1191_v38 = vsel %vm1063_vm11, %v999_v23, %v1127_v29  ;;  %v1098_v39 = vmul.f32 0.2, %v970_v30  ;;  %vm1066_vm13 = vcmp.ge.f32.partialorder %v1002_v31, 0.0  ;;  %v1130_v41 = vmul.f32 0.2, %v1002_v31 }
  0xf4   :  { %vm1032_vm14 = vcmp.ge.f32.partialorder %v968_v34, 0.0  ;;  %v1096_v42 = vmul.f32 0.2, %v968_v34  ;;  %vm1064_vm15 = vcmp.ge.f32.partialorder %v1000_v35, 0.0  ;;  %v538_v43 = vpop.f32.mrf.mxu0  ;;  %v666_v44 = vpop.f32.mrf.mxu1  ;;  %v1128_v46 = vmul.f32 0.2, %v1000_v35 }
  0xf5   :  { %v1162_v45 = vsel %vm1034_vm12, %v970_v30, %v1098_v39  ;;  %v973_v47 = vadd.f32 %v1971_v36, %v2224_v40  ;;  %v1005_v48 = vadd.f32 %v2003_v37, %v2224_v40  ;;  %v1194_v50 = vsel %vm1066_vm13, %v1002_v31, %v1130_v41 }
  0xf6   :  { %v1732_v49 = vpack.c.bf16 %v1162_v45, %v1161_v25  ;;  %v1160_v51 = vsel %vm1032_vm14, %v968_v34, %v1096_v42  ;;  %v971_v52 = vadd.f32 %v2224_v40, %v538_v43  ;;  %v1972_v53 = vpop.f32.mrf.mxu0  ;;  %v2004_v54 = vpop.f32.mrf.mxu1  ;;  %v1812_v55 = vpack.c.bf16 %v1194_v50, %v1193_v32 }
  0xf7   :  { %v1727_v56 = vpack.c.bf16 %v1160_v51, %v1159_v33  ;;  %v1192_v57 = vsel %vm1064_vm15, %v1000_v35, %v1128_v46  ;;  %vm1037_vm0 = vcmp.ge.f32.partialorder %v973_v47, 0.0  ;;  %v1101_v59 = vmul.f32 0.2, %v973_v47 }
  0xf8   :  { %1876 = vst [vmem:[%s2392_s3 + $0x18] sm:$0xff] %v1732_v49   ;;  %v1807_v58 = vpack.c.bf16 %v1192_v57, %v1191_v38  ;;  %vm1069_vm1 = vcmp.ge.f32.partialorder %v1005_v48, 0.0  ;;  %v1133_v60 = vmul.f32 0.2, %v1005_v48  ;;  %v541_v61 = vpop.f32.mrf.mxu0  ;;  %v669_v62 = vpop.f32.mrf.mxu1  ;;  %1892 = vst [vmem:[%s2392_s3 + $0x98] sm:$0xff] %v1812_v55   ;;  %vm1035_vm2 = vcmp.ge.f32.partialorder %v971_v52, 0.0 }
  0xf9   :  { %1875 = vst [vmem:[%s2392_s3 + $0x10] sm:$0xff] %v1727_v56   ;;  %v1099_v63 = vmul.f32 0.2, %v971_v52  ;;  %v1003_v0 = vadd.f32 %v2224_v40, %v666_v44  ;;  %v974_v1 = vadd.f32 %v1972_v53, %v2224_v40  ;;  %v1165_v2 = vsel %vm1037_vm0, %v973_v47, %v1101_v59 }
  0xfa   :  { %1891 = vst [vmem:[%s2392_s3 + $0x90] sm:$0xff] %v1807_v58   ;;  %v1197_v3 = vsel %vm1069_vm1, %v1005_v48, %v1133_v60  ;;  %v1006_v4 = vadd.f32 %v2004_v54, %v2224_v40  ;;  %v972_v5 = vadd.f32 %v2224_v40, %v541_v61  ;;  %v1975_v6 = vpop.f32.mrf.mxu0  ;;  %v2007_v7 = vpop.f32.mrf.mxu1  ;;  %v1004_v16 = vadd.f32 %v2224_v40, %v669_v62 }
  0xfb   :  { %v1163_v8 = vsel %vm1035_vm2, %v971_v52, %v1099_v63  ;;  %vm1067_vm3 = vcmp.ge.f32.partialorder %v1003_v0, 0.0  ;;  %v1131_v9 = vmul.f32 0.2, %v1003_v0  ;;  %vm1038_vm4 = vcmp.ge.f32.partialorder %v974_v1, 0.0 }
  0xfc   :  { %v1102_v10 = vmul.f32 0.2, %v974_v1  ;;  %vm1070_vm5 = vcmp.ge.f32.partialorder %v1006_v4, 0.0  ;;  %v1134_v11 = vmul.f32 0.2, %v1006_v4  ;;  %vm1036_vm6 = vcmp.ge.f32.partialorder %v972_v5, 0.0  ;;  %v554_v12 = vpop.f32.mrf.mxu0  ;;  %v682_v13 = vpop.f32.mrf.mxu1 }
  0xfd   :  { %v1195_v14 = vsel %vm1067_vm3, %v1003_v0, %v1131_v9  ;;  %v1100_v15 = vmul.f32 0.2, %v972_v5  ;;  %v977_v17 = vadd.f32 %v1975_v6, %v2224_v40  ;;  %v1009_v20 = vadd.f32 %v2007_v7, %v2224_v40 }
  0xfe   :  { %v1166_v18 = vsel %vm1038_vm4, %v974_v1, %v1102_v10  ;;  %v1198_v19 = vsel %vm1070_vm5, %v1006_v4, %v1134_v11  ;;  %v975_v21 = vadd.f32 %v2224_v40, %v554_v12  ;;  %v1976_v22 = vpop.f32.mrf.mxu0  ;;  %v2008_v23 = vpop.f32.mrf.mxu1  ;;  %vm1068_vm7 = vcmp.ge.f32.partialorder %v1004_v16, 0.0 }
  0xff   :  { %v1742_v24 = vpack.c.bf16 %v1166_v18, %v1165_v2  ;;  %v1822_v25 = vpack.c.bf16 %v1198_v19, %v1197_v3  ;;  %v1164_v26 = vsel %vm1036_vm6, %v972_v5, %v1100_v15  ;;  %v1132_v28 = vmul.f32 0.2, %v1004_v16 }
 0x100   :  { %v1737_v27 = vpack.c.bf16 %v1164_v26, %v1163_v8  ;;  %vm1041_vm8 = vcmp.ge.f32.partialorder %v977_v17, 0.0  ;;  %v1105_v29 = vmul.f32 0.2, %v977_v17  ;;  %v557_v30 = vpop.f32.mrf.mxu0  ;;  %v685_v31 = vpop.f32.mrf.mxu1  ;;  %vm1073_vm9 = vcmp.ge.f32.partialorder %v1009_v20, 0.0 }
 0x101   :  { %1878 = vst [vmem:[%s2392_s3 + $0x28] sm:$0xff] %v1742_v24   ;;  %1894 = vst [vmem:[%s2392_s3 + $0xa8] sm:$0xff] %v1822_v25   ;;  %v1137_v32 = vmul.f32 0.2, %v1009_v20  ;;  %vm1039_vm10 = vcmp.ge.f32.partialorder %v975_v21, 0.0  ;;  %v1196_v34 = vsel %vm1068_vm7, %v1004_v16, %v1132_v28  ;;  %v1007_v36 = vadd.f32 %v2224_v40, %v682_v13 }
 0x102   :  { %v1103_v33 = vmul.f32 0.2, %v975_v21  ;;  %1877 = vst [vmem:[%s2392_s3 + $0x20] sm:$0xff] %v1737_v27   ;;  %v1169_v35 = vsel %vm1041_vm8, %v977_v17, %v1105_v29  ;;  %v978_v37 = vadd.f32 %v1976_v22, %v2224_v40  ;;  %v1979_v38 = vpop.f32.mrf.mxu0  ;;  %v2011_v39 = vpop.f32.mrf.mxu1  ;;  %v1817_v41 = vpack.c.bf16 %v1196_v34, %v1195_v14 }
 0x103   :  { %v1201_v42 = vsel %vm1073_vm9, %v1009_v20, %v1137_v32  ;;  %v1010_v44 = vadd.f32 %v2008_v23, %v2224_v40  ;;  %vm1071_vm11 = vcmp.ge.f32.partialorder %v1007_v36, 0.0  ;;  %v1135_v45 = vmul.f32 0.2, %v1007_v36 }
 0x104   :  { %v1167_v43 = vsel %vm1039_vm10, %v975_v21, %v1103_v33  ;;  %vm1042_vm12 = vcmp.ge.f32.partialorder %v978_v37, 0.0  ;;  %v1106_v46 = vmul.f32 0.2, %v978_v37  ;;  %v570_v47 = vpop.f32.mrf.mxu0  ;;  %v698_v48 = vpop.f32.mrf.mxu1  ;;  %1893 = vst [vmem:[%s2392_s3 + $0xa0] sm:$0xff] %v1817_v41   ;;  %v976_v50 = vadd.f32 %v2224_v40, %v557_v30 }
 0x105   :  { %vm1074_vm13 = vcmp.ge.f32.partialorder %v1010_v44, 0.0  ;;  %v1138_v49 = vmul.f32 0.2, %v1010_v44  ;;  %v1008_v51 = vadd.f32 %v2224_v40, %v685_v31  ;;  %v1199_v52 = vsel %vm1071_vm11, %v1007_v36, %v1135_v45 }
 0x106   :  { %v1170_v53 = vsel %vm1042_vm12, %v978_v37, %v1106_v46  ;;  %v981_v54 = vadd.f32 %v1979_v38, %v2224_v40  ;;  %v1013_v55 = vadd.f32 %v2011_v39, %v2224_v40  ;;  %v1980_v56 = vpop.f32.mrf.mxu0  ;;  %v2012_v57 = vpop.f32.mrf.mxu1  ;;  %vm1040_vm14 = vcmp.ge.f32.partialorder %v976_v50, 0.0 }
 0x107   :  { %v1752_v58 = vpack.c.bf16 %v1170_v53, %v1169_v35  ;;  %v1202_v59 = vsel %vm1074_vm13, %v1010_v44, %v1138_v49  ;;  %v1104_v60 = vmul.f32 0.2, %v976_v50  ;;  %vm1072_vm15 = vcmp.ge.f32.partialorder %v1008_v51, 0.0 }
 0x108   :  { %v1832_v61 = vpack.c.bf16 %v1202_v59, %v1201_v42  ;;  %v1136_v62 = vmul.f32 0.2, %v1008_v51  ;;  %vm1045_vm0 = vcmp.ge.f32.partialorder %v981_v54, 0.0  ;;  %v573_v63 = vpop.f32.mrf.mxu0  ;;  %v701_v0 = vpop.f32.mrf.mxu1  ;;  %v1109_v2 = vmul.f32 0.2, %v981_v54 }
 0x109   :  { %1880 = vst [vmem:[%s2392_s3 + $0x38] sm:$0xff] %v1752_v58   ;;  %v1168_v1 = vsel %vm1040_vm14, %v976_v50, %v1104_v60  ;;  %vm1077_vm1 = vcmp.ge.f32.partialorder %v1013_v55, 0.0  ;;  %v1141_v3 = vmul.f32 0.2, %v1013_v55  ;;  %v979_v6 = vadd.f32 %v2224_v40, %v570_v47 }
 0x10a   :  { %1896 = vst [vmem:[%s2392_s3 + $0xb8] sm:$0xff] %v1832_v61   ;;  %v1747_v4 = vpack.c.bf16 %v1168_v1, %v1167_v43  ;;  %v1200_v5 = vsel %vm1072_vm15, %v1008_v51, %v1136_v62  ;;  %v1011_v7 = vadd.f32 %v2224_v40, %v698_v48  ;;  %v1983_v8 = vpop.f32.mrf.mxu0  ;;  %v2015_v9 = vpop.f32.mrf.mxu1  ;;  %v1173_v11 = vsel %vm1045_vm0, %v981_v54, %v1109_v2 }
 0x10b   :  { %v1827_v10 = vpack.c.bf16 %v1200_v5, %v1199_v52  ;;  %v1205_v12 = vsel %vm1077_vm1, %v1013_v55, %v1141_v3  ;;  %v982_v13 = vadd.f32 %v1980_v56, %v2224_v40  ;;  %vm1043_vm2 = vcmp.ge.f32.partialorder %v979_v6, 0.0 }
 0x10c   :  { %1879 = vst [vmem:[%s2392_s3 + $0x30] sm:$0xff] %v1747_v4   ;;  %v1107_v14 = vmul.f32 0.2, %v979_v6  ;;  %vm1075_vm3 = vcmp.ge.f32.partialorder %v1011_v7, 0.0  ;;  %v1139_v15 = vmul.f32 0.2, %v1011_v7  ;;  %v586_v16 = vpop.f32.mrf.mxu0  ;;  %v714_v17 = vpop.f32.mrf.mxu1  ;;  %v1014_v19 = vadd.f32 %v2012_v57, %v2224_v40 }
 0x10d   :  { %1895 = vst [vmem:[%s2392_s3 + $0xb0] sm:$0xff] %v1827_v10   ;;  %vm1046_vm4 = vcmp.ge.f32.partialorder %v982_v13, 0.0  ;;  %v1110_v18 = vmul.f32 0.2, %v982_v13  ;;  %v980_v20 = vadd.f32 %v2224_v40, %v573_v63  ;;  %v1012_v23 = vadd.f32 %v2224_v40, %v701_v0 }
 0x10e   :  { %v1171_v21 = vsel %vm1043_vm2, %v979_v6, %v1107_v14  ;;  %v1203_v22 = vsel %vm1075_vm3, %v1011_v7, %v1139_v15  ;;  %v985_v24 = vadd.f32 %v1983_v8, %v2224_v40  ;;  %v1984_v25 = vpop.f32.mrf.mxu0  ;;  %v2016_v26 = vpop.f32.mrf.mxu1  ;;  %vm1078_vm5 = vcmp.ge.f32.partialorder %v1014_v19, 0.0 }
 0x10f   :  { %v1174_v27 = vsel %vm1046_vm4, %v982_v13, %v1110_v18  ;;  %v1142_v28 = vmul.f32 0.2, %v1014_v19  ;;  %vm1044_vm6 = vcmp.ge.f32.partialorder %v980_v20, 0.0  ;;  %v1108_v30 = vmul.f32 0.2, %v980_v20 }
 0x110   :  { %v1762_v29 = vpack.c.bf16 %v1174_v27, %v1173_v11  ;;  %vm1076_vm7 = vcmp.ge.f32.partialorder %v1012_v23, 0.0  ;;  %v1140_v31 = vmul.f32 0.2, %v1012_v23  ;;  %v589_v32 = vpop.f32.mrf.mxu0  ;;  %v717_v33 = vpop.f32.mrf.mxu1  ;;  %vm1049_vm8 = vcmp.ge.f32.partialorder %v985_v24, 0.0 }
 0x111   :  { %v1206_v34 = vsel %vm1078_vm5, %v1014_v19, %v1142_v28  ;;  %v1113_v35 = vmul.f32 0.2, %v985_v24  ;;  %v1017_v36 = vadd.f32 %v2015_v9, %v2224_v40  ;;  %v1172_v38 = vsel %vm1044_vm6, %v980_v20, %v1108_v30 }
 0x112   :  { %1882 = vst [vmem:[%s2392_s3 + $0x48] sm:$0xff] %v1762_v29   ;;  %v1842_v37 = vpack.c.bf16 %v1206_v34, %v1205_v12  ;;  %v1204_v39 = vsel %vm1076_vm7, %v1012_v23, %v1140_v31  ;;  %v983_v41 = vadd.f32 %v2224_v40, %v586_v16  ;;  %v1987_v42 = vpop.f32.mrf.mxu0  ;;  %v2019_v43 = vpop.f32.mrf.mxu1  ;;  %v1757_v44 = vpack.c.bf16 %v1172_v38, %v1171_v21 }
 0x113   :  { %v1837_v45 = vpack.c.bf16 %v1204_v39, %v1203_v22  ;;  %v1177_v46 = vsel %vm1049_vm8, %v985_v24, %v1113_v35  ;;  %vm1081_vm9 = vcmp.ge.f32.partialorder %v1017_v36, 0.0  ;;  %v1145_v47 = vmul.f32 0.2, %v1017_v36 }
 0x114   :  { %1898 = vst [vmem:[%s2392_s3 + $0xc8] sm:$0xff] %v1842_v37   ;;  %vm1047_vm10 = vcmp.ge.f32.partialorder %v983_v41, 0.0  ;;  %v1111_v48 = vmul.f32 0.2, %v983_v41  ;;  %v1015_v49 = vadd.f32 %v2224_v40, %v714_v17  ;;  %v602_v50 = vpop.f32.mrf.mxu0  ;;  %v730_v51 = vpop.f32.mrf.mxu1  ;;  %1881 = vst [vmem:[%s2392_s3 + $0x40] sm:$0xff] %v1757_v44   ;;  %v986_v52 = vadd.f32 %v1984_v25, %v2224_v40 }
 0x115   :  { %1897 = vst [vmem:[%s2392_s3 + $0xc0] sm:$0xff] %v1837_v45   ;;  %v1018_v53 = vadd.f32 %v2016_v26, %v2224_v40  ;;  %v984_v54 = vadd.f32 %v2224_v40, %v589_v32  ;;  %v1016_v55 = vadd.f32 %v2224_v40, %v717_v33  ;;  %v1209_v56 = vsel %vm1081_vm9, %v1017_v36, %v1145_v47 }
 0x116   :  { %v1175_v57 = vsel %vm1047_vm10, %v983_v41, %v1111_v48  ;;  %vm1079_vm11 = vcmp.ge.f32.partialorder %v1015_v49, 0.0  ;;  %v1143_v58 = vmul.f32 0.2, %v1015_v49  ;;  %v1988_v59 = vpop.f32.mrf.mxu0  ;;  %v2020_v60 = vpop.f32.mrf.mxu1  ;;  %vm1050_vm12 = vcmp.ge.f32.partialorder %v986_v52, 0.0 }
 0x117   :  { %v1114_v61 = vmul.f32 0.2, %v986_v52  ;;  %vm1082_vm13 = vcmp.ge.f32.partialorder %v1018_v53, 0.0  ;;  %v1146_v62 = vmul.f32 0.2, %v1018_v53  ;;  %vm1048_vm14 = vcmp.ge.f32.partialorder %v984_v54, 0.0 }
 0x118   :  { %v1207_v63 = vsel %vm1079_vm11, %v1015_v49, %v1143_v58  ;;  %v1112_v0 = vmul.f32 0.2, %v984_v54  ;;  %vm1080_vm15 = vcmp.ge.f32.partialorder %v1016_v55, 0.0  ;;  %v605_v1 = vpop.f32.mrf.mxu0  ;;  %v733_v2 = vpop.f32.mrf.mxu1  ;;  %v1144_v5 = vmul.f32 0.2, %v1016_v55 }
 0x119   :  { %v1178_v3 = vsel %vm1050_vm12, %v986_v52, %v1114_v61  ;;  %v1210_v4 = vsel %vm1082_vm13, %v1018_v53, %v1146_v62  ;;  %v989_v6 = vadd.f32 %v1987_v42, %v2224_v40  ;;  %v1021_v10 = vadd.f32 %v2019_v43, %v2224_v40 }
 0x11a   :  { %v1772_v7 = vpack.c.bf16 %v1178_v3, %v1177_v46  ;;  %v1852_v8 = vpack.c.bf16 %v1210_v4, %v1209_v56  ;;  %v1176_v9 = vsel %vm1048_vm14, %v984_v54, %v1112_v0  ;;  %v1991_v11 = vpop.f32.mrf.mxu0  ;;  %v2023_v12 = vpop.f32.mrf.mxu1  ;;  %v1208_v14 = vsel %vm1080_vm15, %v1016_v55, %v1144_v5 }
 0x11b   :  { %v1767_v13 = vpack.c.bf16 %v1176_v9, %v1175_v57  ;;  %vm1053_vm0 = vcmp.ge.f32.partialorder %v989_v6, 0.0  ;;  %v1117_v15 = vmul.f32 0.2, %v989_v6  ;;  %v1847_v16 = vpack.c.bf16 %v1208_v14, %v1207_v63 }
 0x11c   :  { %1884 = vst [vmem:[%s2392_s3 + $0x58] sm:$0xff] %v1772_v7   ;;  %1900 = vst [vmem:[%s2392_s3 + $0xd8] sm:$0xff] %v1852_v8   ;;  %vm1085_vm1 = vcmp.ge.f32.partialorder %v1021_v10, 0.0  ;;  %v1149_v17 = vmul.f32 0.2, %v1021_v10  ;;  %v987_v18 = vadd.f32 %v2224_v40, %v602_v50  ;;  %v1019_v19 = vadd.f32 %v2224_v40, %v730_v51  ;;  %v618_v25 = vpop.f32.mrf.mxu0  ;;  %v746_v26 = vpop.f32.mrf.mxu1 }
 0x11d   :  { %1883 = vst [vmem:[%s2392_s3 + $0x50] sm:$0xff] %v1767_v13   ;;  %v990_v20 = vadd.f32 %v1988_v59, %v2224_v40  ;;  %v1022_v21 = vadd.f32 %v2020_v60, %v2224_v40  ;;  %1899 = vst [vmem:[%s2392_s3 + $0xd0] sm:$0xff] %v1847_v16   ;;  %v1181_v22 = vsel %vm1053_vm0, %v989_v6, %v1117_v15 }
 0x11e   :  { %vm1051_vm2 = vcmp.ge.f32.partialorder %v987_v18, 0.0  ;;  %v1115_v23 = vmul.f32 0.2, %v987_v18  ;;  %v988_v24 = vadd.f32 %v2224_v40, %v605_v1  ;;  %v1213_v27 = vsel %vm1085_vm1, %v1021_v10, %v1149_v17  ;;  %v1992_v39 = vpop.f32.mrf.mxu0  ;;  %v2024_v41 = vpop.f32.mrf.mxu1 }
 0x11f   :  { %vm1083_vm3 = vcmp.ge.f32.partialorder %v1019_v19, 0.0  ;;  %vm1054_vm4 = vcmp.ge.f32.partialorder %v990_v20, 0.0  ;;  %v1118_v28 = vmul.f32 0.2, %v990_v20  ;;  %v1147_v29 = vmul.f32 0.2, %v1019_v19 }
 0x120   :  { %vm1086_vm5 = vcmp.ge.f32.partialorder %v1022_v21, 0.0  ;;  %v1150_v30 = vmul.f32 0.2, %v1022_v21  ;;  %vm1052_vm6 = vcmp.ge.f32.partialorder %v988_v24, 0.0  ;;  %v1179_v31 = vsel %vm1051_vm2, %v987_v18, %v1115_v23  ;;  %v621_v55 = vpop.f32.mrf.mxu0  ;;  %v749_v56 = vpop.f32.mrf.mxu1 }
 0x121   :  { %v1182_v32 = vsel %vm1054_vm4, %v990_v20, %v1118_v28  ;;  %v1116_v33 = vmul.f32 0.2, %v988_v24  ;;  %v1020_v34 = vadd.f32 %v2224_v40, %v733_v2  ;;  %v993_v37 = vadd.f32 %v1991_v11, %v2224_v40 }
 0x122   :  { %v1782_v35 = vpack.c.bf16 %v1182_v32, %v1181_v22  ;;  %v1214_v36 = vsel %vm1086_vm5, %v1022_v21, %v1150_v30  ;;  %v1025_v38 = vadd.f32 %v2023_v12, %v2224_v40  ;;  %v1211_v45 = vsel %vm1083_vm3, %v1019_v19, %v1147_v29 }
 0x123   :  { %v1862_v42 = vpack.c.bf16 %v1214_v36, %v1213_v27  ;;  %v1180_v43 = vsel %vm1052_vm6, %v988_v24, %v1116_v33  ;;  %vm1084_vm7 = vcmp.ge.f32.partialorder %v1020_v34, 0.0  ;;  %v1148_v44 = vmul.f32 0.2, %v1020_v34 }
 0x124   :  { %1886 = vst [vmem:[%s2392_s3 + $0x68] sm:$0xff] %v1782_v35   ;;  %v1777_v46 = vpack.c.bf16 %v1180_v43, %v1179_v31  ;;  %vm1057_vm8 = vcmp.ge.f32.partialorder %v993_v37, 0.0  ;;  %v1121_v47 = vmul.f32 0.2, %v993_v37  ;;  %vm1089_vm9 = vcmp.ge.f32.partialorder %v1025_v38, 0.0 }
 0x125   :  { %1902 = vst [vmem:[%s2392_s3 + $0xe8] sm:$0xff] %v1862_v42   ;;  %v1212_v48 = vsel %vm1084_vm7, %v1020_v34, %v1148_v44  ;;  %v1153_v49 = vmul.f32 0.2, %v1025_v38  ;;  %v991_v50 = vadd.f32 %v2224_v40, %v618_v25  ;;  %v1023_v52 = vadd.f32 %v2224_v40, %v746_v26 }
 0x126   :  { %1885 = vst [vmem:[%s2392_s3 + $0x60] sm:$0xff] %v1777_v46   ;;  %v1857_v51 = vpack.c.bf16 %v1212_v48, %v1211_v45  ;;  %v994_v53 = vadd.f32 %v1992_v39, %v2224_v40  ;;  %v1026_v54 = vadd.f32 %v2024_v41, %v2224_v40  ;;  %v1185_v57 = vsel %vm1057_vm8, %v993_v37, %v1121_v47 }
 0x127   :  { %v1217_v58 = vsel %vm1089_vm9, %v1025_v38, %v1153_v49  ;;  %v1119_v60 = vmul.f32 0.2, %v991_v50  ;;  %v992_v62 = vadd.f32 %v2224_v40, %v621_v55  ;;  %v1024_v63 = vadd.f32 %v2224_v40, %v749_v56 }
 0x128   :  { %1901 = vst [vmem:[%s2392_s3 + $0xe0] sm:$0xff] %v1857_v51   ;;  %vm1058_vm10 = vcmp.ge.f32.partialorder %v994_v53, 0.0  ;;  %v1122_v59 = vmul.f32 0.2, %v994_v53  ;;  %vm1090_vm11 = vcmp.ge.f32.partialorder %v1026_v54, 0.0  ;;  %vm1055_vm12 = vcmp.ge.f32.partialorder %v991_v50, 0.0 }
 0x129   :  { %v1154_v61 = vmul.f32 0.2, %v1026_v54  ;;  %vm1087_vm13 = vcmp.ge.f32.partialorder %v1023_v52, 0.0  ;;  %v1151_v0 = vmul.f32 0.2, %v1023_v52  ;;  %vm1056_vm14 = vcmp.ge.f32.partialorder %v992_v62, 0.0 }
 0x12a   :  { %v1186_v1 = vsel %vm1058_vm10, %v994_v53, %v1122_v59  ;;  %v1120_v4 = vmul.f32 0.2, %v992_v62  ;;  %vm1088_vm15 = vcmp.ge.f32.partialorder %v1024_v63, 0.0  ;;  %v1152_v6 = vmul.f32 0.2, %v1024_v63 }
 0x12b   :  { %v1792_v2 = vpack.c.bf16 %v1186_v1, %v1185_v57  ;;  %v1218_v3 = vsel %vm1090_vm11, %v1026_v54, %v1154_v61  ;;  %v1183_v7 = vsel %vm1055_vm12, %v991_v50, %v1119_v60  ;;  %v1215_v9 = vsel %vm1087_vm13, %v1023_v52, %v1151_v0 }
 0x12c   :  { %v1872_v5 = vpack.c.bf16 %v1218_v3, %v1217_v58  ;;  %v1184_v8 = vsel %vm1056_vm14, %v992_v62, %v1120_v4  ;;  %v1216_v10 = vsel %vm1088_vm15, %v1024_v63, %v1152_v6 }
 0x12d   :  { %1888 = vst [vmem:[%s2392_s3 + $0x78] sm:$0xff] %v1792_v2   ;;  %v1787_v40 = vpack.c.bf16 %v1184_v8, %v1183_v7  ;;  %v1867_v11 = vpack.c.bf16 %v1216_v10, %v1215_v9 }
 0x12e   :  { %1904 = vst [vmem:[%s2392_s3 + $0xf8] sm:$0xff] %v1872_v5  }
 0x12f   :  { %1887 = vst [vmem:[%s2392_s3 + $0x70] sm:$0xff] %v1787_v40   ;;  %1903 = vst [vmem:[%s2392_s3 + $0xf0] sm:$0xff] %v1867_v11  }

// kernel: _lambda_.9
= control target key start
LH: loop header
LB: loop body
LE: loop exit
PB: predicated region body
PF: predicated region fallthrough
CT: control target
= control target key end

     0   :  { %s764_s1 = inlined_call_operand.vmem [shape: bf16[128,128], index: 1, kind: input, shape index: {}]   ;;  %s765_s0 = inlined_call_operand.vmem [shape: bf16[128,128], index: 0, kind: input, shape index: {}]   ;;  %s766_s2 = inlined_call_operand.vmem [shape: bf16[128,128], index: 2, kind: output, shape index: {0}]   ;;  %s767_s3 = inlined_call_operand.vmem [shape: f32[8,128], index: 3, kind: output, shape index: {1}]   ;;  %s768_s4 = inlined_call_operand.vmem [shape: f32[8,128], index: 4, kind: output, shape index: {2}]  }
   0x1   :  { %v645_v0 = vld [vmem:[%s764_s1 + $0x38] sm:$0xff]   ;;  %v646_v1 = vld [vmem:[%s764_s1 + $0x30] sm:$0xff]   ;;  %v647_v2 = vld [vmem:[%s764_s1 + $0x28] sm:$0xff]  }
   0x2   :  { %597 = vmatprep.subr.bf16.mxu0 %v645_v0  ;;  %629 = vmatprep.subr.bf16.mxu1 %v645_v0  ;;  %v648_v3 = vld [vmem:[%s764_s1 + $0x20] sm:$0xff]   ;;  %v649_v5 = vld [vmem:[%s764_s1 + $0x18] sm:$0xff]   ;;  %v650_v7 = vld [vmem:[%s764_s1 + $0x10] sm:$0xff]  }
   0x3   :  { %598 = vmatpush3.bf16.msra.mxu0 %v645_v0  ;;  %637 = vmatpush3.bf16.msra.mxu1 %v645_v0  ;;  %v653_v4 = vld [vmem:[%s765_s0] sm:$0xff]   ;;  %v651_v8 = vld [vmem:[%s764_s1 + $0x8] sm:$0xff]   ;;  %v655_v12 = vld [vmem:[%s765_s0 + $0x10] sm:$0xff]  }
   0x4   :  { %599 = vmatprep.subr.bf16.mxu0 %v646_v1  ;;  %630 = vmatprep.subr.bf16.mxu1 %v646_v1  ;;  %v657_v6 = vld [vmem:[%s765_s0 + $0x20] sm:$0xff]   ;;  %v654_v10 = vld [vmem:[%s765_s0 + $0x8] sm:$0xff]   ;;  %v659_v13 = vld [vmem:[%s765_s0 + $0x30] sm:$0xff]  }
   0x5   :  { %613 = vmatprep.mubr.bf16.mxu0 %v653_v4  ;;  %621 = vmatprep.mubr.bf16.mxu1 %v657_v6  ;;  %v652_v9 = vld [vmem:[%s764_s1] sm:$0xff]   ;;  %v658_v11 = vld [vmem:[%s765_s0 + $0x28] sm:$0xff]   ;;  %v656_v14 = vld [vmem:[%s765_s0 + $0x18] sm:$0xff]  }
   0x6   :  { %v660_v15 = vld [vmem:[%s765_s0 + $0x38] sm:$0xff]  }
   0x7   :  { %600 = vmatpush3.bf16.msra.mxu0 %v646_v1  ;;  %638 = vmatpush3.bf16.msra.mxu1 %v646_v1 }
   0x8   :  { %601 = vmatprep.subr.bf16.mxu0 %v647_v2  ;;  %631 = vmatprep.subr.bf16.mxu1 %v647_v2 }
   0xb   :  { %602 = vmatpush3.bf16.msra.mxu0 %v647_v2  ;;  %639 = vmatpush3.bf16.msra.mxu1 %v647_v2 }
   0xc   :  { %603 = vmatprep.subr.bf16.mxu0 %v648_v3  ;;  %632 = vmatprep.subr.bf16.mxu1 %v648_v3 }
   0xf   :  { %604 = vmatpush3.bf16.msra.mxu0 %v648_v3  ;;  %640 = vmatpush3.bf16.msra.mxu1 %v648_v3 }
  0x10   :  { %605 = vmatprep.subr.bf16.mxu0 %v649_v5  ;;  %633 = vmatprep.subr.bf16.mxu1 %v649_v5 }
  0x13   :  { %606 = vmatpush3.bf16.msra.mxu0 %v649_v5  ;;  %641 = vmatpush3.bf16.msra.mxu1 %v649_v5 }
  0x14   :  { %607 = vmatprep.subr.bf16.mxu0 %v650_v7  ;;  %634 = vmatprep.subr.bf16.mxu1 %v650_v7 }
  0x17   :  { %608 = vmatpush3.bf16.msra.mxu0 %v650_v7  ;;  %642 = vmatpush3.bf16.msra.mxu1 %v650_v7 }
  0x18   :  { %609 = vmatprep.subr.bf16.mxu0 %v651_v8  ;;  %635 = vmatprep.subr.bf16.mxu1 %v651_v8 }
  0x1b   :  { %610 = vmatpush3.bf16.msra.mxu0 %v651_v8  ;;  %643 = vmatpush3.bf16.msra.mxu1 %v651_v8 }
  0x1c   :  { %611 = vmatprep.subr.bf16.mxu0 %v652_v9  ;;  %636 = vmatprep.subr.bf16.mxu1 %v652_v9 }
  0x1f   :  { %612 = vmatpush3.bf16.msra.mxu0 %v652_v9  ;;  %644 = vmatpush3.bf16.msra.mxu1 %v652_v9 }
  0x22   :  { %614 = vmatmul.mubr.bf16.vlgmr.msra.gmra.mxu0 %v654_v10  ;;  %622 = vmatmul.mubr.bf16.vlgmr.msra.gmra.mxu1 %v658_v11 }
  0x23   :  { %617 = vmatprep.mubr.bf16.mxu0 %v655_v12  ;;  %625 = vmatprep.mubr.bf16.mxu1 %v659_v13 }
  0x2a   :  { %618 = vmatmul.mubr.bf16.gmra.mxu0 %v656_v14  ;;  %626 = vmatmul.mubr.bf16.gmra.mxu1 %v660_v15 }
  0xe2   :  { %v615_v16 = vpop.f32.mrf.mxu0  ;;  %v623_v17 = vpop.f32.mrf.mxu1 }
  0xe3   :  { %v435_v33 = vmul.f32 %v615_v16, %v615_v16  ;;  %v443_v3 = vmul.f32 %v623_v17, %v623_v17 }
  0xe4   :  { %v218_v18 = vpop.f32.mrf.mxu0  ;;  %v250_v19 = vpop.f32.mrf.mxu1 }
  0xe5   :  { %v433_v24 = vmul.f32 %v218_v18, %v218_v18  ;;  %v441_v61 = vmul.f32 %v250_v19, %v250_v19 }
  0xe6   :  { %v616_v20 = vpop.f32.mrf.mxu0  ;;  %v624_v21 = vpop.f32.mrf.mxu1 }
  0xe7   :  { %v542_v22 = vpack.c.bf16 %v616_v20, %v615_v16  ;;  %v562_v23 = vpack.c.bf16 %v624_v21, %v623_v17  ;;  %v436_v38 = vmul.f32 %v616_v20, %v616_v20  ;;  %v444_v6 = vmul.f32 %v624_v21, %v624_v21 }
  0xe8   :  { %v221_v25 = vpop.f32.mrf.mxu0  ;;  %v253_v26 = vpop.f32.mrf.mxu1 }
  0xe9   :  { %574 = vst [vmem:[%s766_s2 + $0x8] sm:$0xff] %v542_v22   ;;  %v537_v27 = vpack.c.bf16 %v221_v25, %v218_v18  ;;  %v412_v28 = vadd.f32 %v221_v25, %v218_v18  ;;  %v434_v29 = vmul.f32 %v221_v25, %v221_v25  ;;  %578 = vst [vmem:[%s766_s2 + $0x28] sm:$0xff] %v562_v23  }
  0xea   :  { %v557_v30 = vpack.c.bf16 %v253_v26, %v250_v19  ;;  %v619_v31 = vpop.f32.mrf.mxu0  ;;  %v627_v32 = vpop.f32.mrf.mxu1  ;;  %v442_v1 = vmul.f32 %v253_v26, %v253_v26 }
  0xeb   :  { %538 = vst [vmem:[%s766_s2] sm:$0xff] %v537_v27   ;;  %v413_v34 = vadd.f32 %v615_v16, %v412_v28  ;;  %v449_v35 = vadd.f32 %v434_v29, %v433_v24  ;;  %v439_v55 = vmul.f32 %v619_v31, %v619_v31  ;;  %v447_v15 = vmul.f32 %v627_v32, %v627_v32 }
  0xec   :  { %577 = vst [vmem:[%s766_s2 + $0x20] sm:$0xff] %v557_v30   ;;  %v234_v36 = vpop.f32.mrf.mxu0  ;;  %v266_v37 = vpop.f32.mrf.mxu1 }
  0xed   :  { %v450_v39 = vadd.f32 %v449_v35, %v435_v33  ;;  %v414_v40 = vadd.f32 %v616_v20, %v413_v34  ;;  %v437_v44 = vmul.f32 %v234_v36, %v234_v36  ;;  %v445_v10 = vmul.f32 %v266_v37, %v266_v37 }
  0xee   :  { %v620_v41 = vpop.f32.mrf.mxu0  ;;  %v628_v42 = vpop.f32.mrf.mxu1 }
  0xef   :  { %v415_v43 = vadd.f32 %v414_v40, %v234_v36  ;;  %v451_v45 = vadd.f32 %v450_v39, %v436_v38  ;;  %v552_v46 = vpack.c.bf16 %v620_v41, %v619_v31  ;;  %v572_v48 = vpack.c.bf16 %v628_v42, %v627_v32 }
  0xf0   :  { %v237_v47 = vpop.f32.mrf.mxu0  ;;  %v269_v49 = vpop.f32.mrf.mxu1  ;;  %v440_v58 = vmul.f32 %v620_v41, %v620_v41  ;;  %v448_v20 = vmul.f32 %v628_v42, %v628_v42 }
  0xf1   :  { %v452_v50 = vadd.f32 %v451_v45, %v437_v44  ;;  %576 = vst [vmem:[%s766_s2 + $0x18] sm:$0xff] %v552_v46   ;;  %v547_v51 = vpack.c.bf16 %v237_v47, %v234_v36  ;;  %v416_v52 = vadd.f32 %v415_v43, %v237_v47  ;;  %v438_v53 = vmul.f32 %v237_v47, %v237_v47 }
  0xf2   :  { %580 = vst [vmem:[%s766_s2 + $0x38] sm:$0xff] %v572_v48   ;;  %v567_v54 = vpack.c.bf16 %v269_v49, %v266_v37  ;;  %v446_v14 = vmul.f32 %v269_v49, %v269_v49 }
  0xf3   :  { %575 = vst [vmem:[%s766_s2 + $0x10] sm:$0xff] %v547_v51   ;;  %v417_v56 = vadd.f32 %v619_v31, %v416_v52  ;;  %v453_v57 = vadd.f32 %v452_v50, %v438_v53 }
  0xf4   :  { %579 = vst [vmem:[%s766_s2 + $0x30] sm:$0xff] %v567_v54  }
  0xf5   :  { %v418_v59 = vadd.f32 %v620_v41, %v417_v56  ;;  %v454_v60 = vadd.f32 %v453_v57, %v439_v55 }
  0xf7   :  { %v455_v62 = vadd.f32 %v454_v60, %v440_v58  ;;  %v419_v63 = vadd.f32 %v418_v59, %v250_v19 }
  0xf9   :  { %v420_v0 = vadd.f32 %v419_v63, %v253_v26  ;;  %v456_v2 = vadd.f32 %v455_v62, %v441_v61 }
  0xfb   :  { %v421_v4 = vadd.f32 %v623_v17, %v420_v0  ;;  %v457_v5 = vadd.f32 %v456_v2, %v442_v1 }
  0xfd   :  { %v458_v7 = vadd.f32 %v457_v5, %v443_v3  ;;  %v422_v8 = vadd.f32 %v624_v21, %v421_v4 }
  0xff   :  { %v423_v9 = vadd.f32 %v422_v8, %v266_v37  ;;  %v459_v11 = vadd.f32 %v458_v7, %v444_v6 }
 0x101   :  { %v460_v12 = vadd.f32 %v459_v11, %v445_v10  ;;  %v424_v13 = vadd.f32 %v423_v9, %v269_v49 }
 0x103   :  { %v425_v16 = vadd.f32 %v627_v32, %v424_v13  ;;  %v461_v18 = vadd.f32 %v460_v12, %v446_v14 }
 0x105   :  { %v426_v19 = vadd.f32 %v628_v42, %v425_v16  ;;  %v462_v22 = vadd.f32 %v461_v18, %v447_v15 }
 0x107   :  { %v427_v23 = vrot.slane %v426_v19, 4  ;;  %v463_v24 = vadd.f32 %v462_v22, %v448_v20 }
 0x109   :  { %v428_v25 = vadd.f32 %v427_v23, %v426_v19  ;;  %v464_v17 = vrot.slane %v463_v24, 4 }
 0x10b   :  { %v429_v26 = vrot.slane %v428_v25, 2  ;;  %v465_v27 = vadd.f32 %v464_v17, %v463_v24 }
 0x10d   :  { %v430_v28 = vadd.f32 %v429_v26, %v428_v25  ;;  %v466_v21 = vrot.slane %v465_v27, 2 }
 0x10f   :  { %v431_v29 = vrot.slane %v430_v28, 1  ;;  %v467_v30 = vadd.f32 %v466_v21, %v465_v27 }
 0x111   :  { %v432_v31 = vadd.f32 %v431_v29, %v430_v28  ;;  %v468_v33 = vrot.slane %v467_v30, 1 }
 0x113   :  { %v469_v34 = vadd.f32 %v468_v33, %v467_v30  ;;  %470 = vst [vmem:[%s767_s3] sm:$0xff] %v432_v31 }
 0x115   :  { %471 = vst [vmem:[%s768_s4] sm:$0xff] %v469_v34 }

// kernel: _lambda_.10
= control target key start
LH: loop header
LB: loop body
LE: loop exit
PB: predicated region body
PF: predicated region fallthrough
CT: control target
= control target key end

     0   :  { %s455_s0 = inlined_call_operand.vmem [shape: bf16[128,128], index: 0, kind: input, shape index: {}]   ;;  %s456_s1 = inlined_call_operand.vmem [shape: f32[1,128], index: 1, kind: input, shape index: {}]   ;;  %s457_s2 = inlined_call_operand.vmem [shape: f32[1,128], index: 2, kind: input, shape index: {}]   ;;  %s458_s3 = inlined_call_operand.vmem [shape: bf16[128,128], index: 3, kind: output, shape index: {}]  }
   0x1   :  { %v259_v0 = vld [vmem:[%s455_s0] sm:$0xff]   ;;  %v330_v4 = vld [vmem:[%s455_s0 + $0x8] sm:$0xff]   ;;  %v331_v5 = vld [vmem:[%s455_s0 + $0x10] sm:$0xff]  }
   0x2   :  { %v370_v1 = vld [vmem:[%s456_s1] ss:$0 sm:$0xff]  ;;  %v260_v2 = vunpack.c.l.bf16 %v259_v0  ;;  %v261_v3 = vunpack.c.h.bf16 %v259_v0  ;;  %v332_v6 = vld [vmem:[%s455_s0 + $0x18] sm:$0xff]   ;;  %v264_v8 = vunpack.c.l.bf16 %v330_v4  ;;  %v265_v9 = vunpack.c.h.bf16 %v330_v4  ;;  %v334_v35 = vld [vmem:[%s455_s0 + $0x28] sm:$0xff]  }
   0x3   :  { %v384_v7 = vld [vmem:[%s457_s2] ss:$0 sm:$0xff]  ;;  %v268_v10 = vunpack.c.l.bf16 %v331_v5  ;;  %v269_v11 = vunpack.c.h.bf16 %v331_v5  ;;  %v272_v14 = vunpack.c.l.bf16 %v332_v6  ;;  %v273_v15 = vunpack.c.h.bf16 %v332_v6  ;;  %v335_v48 = vld [vmem:[%s455_s0 + $0x30] sm:$0xff]   ;;  %v336_v4 = vld [vmem:[%s455_s0 + $0x38] sm:$0xff]  }
   0x4   :  { %v53_v12 = vmul.f32 %v260_v2, %v370_v1  ;;  %v54_v13 = vmul.f32 %v261_v3, %v370_v1  ;;  %v55_v16 = vmul.f32 %v264_v8, %v370_v1  ;;  %v56_v17 = vmul.f32 %v265_v9, %v370_v1  ;;  %v333_v34 = vld [vmem:[%s455_s0 + $0x20] sm:$0xff]  }
   0x5   :  { %v57_v18 = vmul.f32 %v268_v10, %v370_v1  ;;  %v58_v19 = vmul.f32 %v269_v11, %v370_v1  ;;  %v59_v22 = vmul.f32 %v272_v14, %v370_v1  ;;  %v60_v23 = vmul.f32 %v273_v15, %v370_v1 }
   0x6   :  { %v76_v20 = vadd.f32 %v384_v7, %v53_v12  ;;  %v77_v21 = vadd.f32 %v384_v7, %v54_v13  ;;  %v78_v24 = vadd.f32 %v384_v7, %v55_v16  ;;  %v79_v25 = vadd.f32 %v384_v7, %v56_v17 }
   0x7   :  { %v80_v26 = vadd.f32 %v384_v7, %v57_v18  ;;  %v81_v27 = vadd.f32 %v384_v7, %v58_v19  ;;  %v82_v42 = vadd.f32 %v384_v7, %v59_v22  ;;  %v83_v43 = vadd.f32 %v384_v7, %v60_v23 }
   0x8   :  { %vm92_vm0 = vcmp.ge.f32.partialorder %v76_v20, 0.0  ;;  %vm93_vm1 = vcmp.ge.f32.partialorder %v77_v21, 0.0  ;;  %v108_v28 = vmul.f32 0.2, %v76_v20  ;;  %v109_v29 = vmul.f32 0.2, %v77_v21 }
   0x9   :  { %vm94_vm2 = vcmp.ge.f32.partialorder %v78_v24, 0.0  ;;  %vm95_vm3 = vcmp.ge.f32.partialorder %v79_v25, 0.0  ;;  %v110_v30 = vmul.f32 0.2, %v78_v24  ;;  %v111_v31 = vmul.f32 0.2, %v79_v25 }
   0xa   :  { %v124_v32 = vsel %vm92_vm0, %v76_v20, %v108_v28  ;;  %v125_v33 = vsel %vm93_vm1, %v77_v21, %v109_v29  ;;  %vm96_vm4 = vcmp.ge.f32.partialorder %v80_v26, 0.0  ;;  %vm97_vm5 = vcmp.ge.f32.partialorder %v81_v27, 0.0 }
   0xb   :  { %v293_v36 = vpack.c.bf16 %v125_v33, %v124_v32  ;;  %v126_v37 = vsel %vm94_vm2, %v78_v24, %v110_v30  ;;  %v127_v38 = vsel %vm95_vm3, %v79_v25, %v111_v31  ;;  %v112_v39 = vmul.f32 0.2, %v80_v26 }
   0xc   :  { %v298_v40 = vpack.c.bf16 %v127_v38, %v126_v37  ;;  %v113_v41 = vmul.f32 0.2, %v81_v27  ;;  %v276_v45 = vunpack.c.l.bf16 %v333_v34  ;;  %v277_v46 = vunpack.c.h.bf16 %v333_v34 }
   0xd   :  { %294 = vst [vmem:[%s458_s3] sm:$0xff] %v293_v36   ;;  %v128_v44 = vsel %vm96_vm4, %v80_v26, %v112_v39  ;;  %v280_v47 = vunpack.c.l.bf16 %v334_v35  ;;  %vm98_vm6 = vcmp.ge.f32.partialorder %v82_v42, 0.0  ;;  %vm99_vm7 = vcmp.ge.f32.partialorder %v83_v43, 0.0 }
   0xe   :  { %337 = vst [vmem:[%s458_s3 + $0x8] sm:$0xff] %v298_v40   ;;  %v129_v49 = vsel %vm97_vm5, %v81_v27, %v113_v41  ;;  %v114_v50 = vmul.f32 0.2, %v82_v42  ;;  %v115_v52 = vmul.f32 0.2, %v83_v43  ;;  %v61_v53 = vmul.f32 %v276_v45, %v370_v1 }
   0xf   :  { %v303_v51 = vpack.c.bf16 %v129_v49, %v128_v44  ;;  %v62_v54 = vmul.f32 %v277_v46, %v370_v1  ;;  %v281_v56 = vunpack.c.h.bf16 %v334_v35  ;;  %v63_v57 = vmul.f32 %v280_v47, %v370_v1 }
  0x10   :  { %v130_v55 = vsel %vm98_vm6, %v82_v42, %v114_v50  ;;  %v284_v58 = vunpack.c.l.bf16 %v335_v48  ;;  %v131_v59 = vsel %vm99_vm7, %v83_v43, %v115_v52  ;;  %v84_v60 = vadd.f32 %v384_v7, %v61_v53 }
  0x11   :  { %338 = vst [vmem:[%s458_s3 + $0x10] sm:$0xff] %v303_v51   ;;  %v85_v61 = vadd.f32 %v384_v7, %v62_v54  ;;  %v285_v62 = vunpack.c.h.bf16 %v335_v48  ;;  %v308_v63 = vpack.c.bf16 %v131_v59, %v130_v55  ;;  %v64_v0 = vmul.f32 %v281_v56, %v370_v1 }
  0x12   :  { %v86_v2 = vadd.f32 %v384_v7, %v63_v57  ;;  %v65_v3 = vmul.f32 %v284_v58, %v370_v1  ;;  %vm100_vm8 = vcmp.ge.f32.partialorder %v84_v60, 0.0  ;;  %v116_v5 = vmul.f32 0.2, %v84_v60 }
  0x13   :  { %vm101_vm9 = vcmp.ge.f32.partialorder %v85_v61, 0.0  ;;  %v117_v6 = vmul.f32 0.2, %v85_v61  ;;  %339 = vst [vmem:[%s458_s3 + $0x18] sm:$0xff] %v308_v63   ;;  %v87_v8 = vadd.f32 %v384_v7, %v64_v0  ;;  %v66_v10 = vmul.f32 %v285_v62, %v370_v1 }
  0x14   :  { %vm102_vm10 = vcmp.ge.f32.partialorder %v86_v2, 0.0  ;;  %v118_v9 = vmul.f32 0.2, %v86_v2  ;;  %v132_v11 = vsel %vm100_vm8, %v84_v60, %v116_v5  ;;  %v88_v13 = vadd.f32 %v384_v7, %v65_v3 }
  0x15   :  { %v133_v12 = vsel %vm101_vm9, %v85_v61, %v117_v6  ;;  %v288_v14 = vunpack.c.l.bf16 %v336_v4  ;;  %vm103_vm11 = vcmp.ge.f32.partialorder %v87_v8, 0.0  ;;  %v119_v16 = vmul.f32 0.2, %v87_v8 }
  0x16   :  { %v313_v15 = vpack.c.bf16 %v133_v12, %v132_v11  ;;  %v134_v17 = vsel %vm102_vm10, %v86_v2, %v118_v9  ;;  %v89_v18 = vadd.f32 %v384_v7, %v66_v10  ;;  %vm104_vm12 = vcmp.ge.f32.partialorder %v88_v13, 0.0 }
  0x17   :  { %v120_v19 = vmul.f32 0.2, %v88_v13  ;;  %v289_v20 = vunpack.c.h.bf16 %v336_v4  ;;  %v135_v21 = vsel %vm103_vm11, %v87_v8, %v119_v16  ;;  %v67_v22 = vmul.f32 %v288_v14, %v370_v1 }
  0x18   :  { %340 = vst [vmem:[%s458_s3 + $0x20] sm:$0xff] %v313_v15   ;;  %v318_v23 = vpack.c.bf16 %v135_v21, %v134_v17  ;;  %vm105_vm13 = vcmp.ge.f32.partialorder %v89_v18, 0.0  ;;  %v121_v24 = vmul.f32 0.2, %v89_v18 }
  0x19   :  { %v136_v25 = vsel %vm104_vm12, %v88_v13, %v120_v19  ;;  %v68_v26 = vmul.f32 %v289_v20, %v370_v1  ;;  %v90_v27 = vadd.f32 %v384_v7, %v67_v22 }
  0x1a   :  { %341 = vst [vmem:[%s458_s3 + $0x28] sm:$0xff] %v318_v23   ;;  %v137_v28 = vsel %vm105_vm13, %v89_v18, %v121_v24 }
  0x1b   :  { %v323_v29 = vpack.c.bf16 %v137_v28, %v136_v25  ;;  %v91_v30 = vadd.f32 %v384_v7, %v68_v26  ;;  %vm106_vm14 = vcmp.ge.f32.partialorder %v90_v27, 0.0  ;;  %v122_v31 = vmul.f32 0.2, %v90_v27 }
  0x1d   :  { %342 = vst [vmem:[%s458_s3 + $0x30] sm:$0xff] %v323_v29   ;;  %vm107_vm15 = vcmp.ge.f32.partialorder %v91_v30, 0.0  ;;  %v123_v32 = vmul.f32 0.2, %v91_v30  ;;  %v138_v33 = vsel %vm106_vm14, %v90_v27, %v122_v31 }
  0x1f   :  { %v139_v1 = vsel %vm107_vm15, %v91_v30, %v123_v32 }
  0x20   :  { %v328_v34 = vpack.c.bf16 %v139_v1, %v138_v33 }
  0x22   :  { %343 = vst [vmem:[%s458_s3 + $0x38] sm:$0xff] %v328_v34  }

// kernel: _lambda_.11
= control target key start
LH: loop header
LB: loop body
LE: loop exit
PB: predicated region body
PF: predicated region fallthrough
CT: control target
= control target key end

     0   :  { %s508_s1 = inlined_call_operand.vmem [shape: bf16[256,128], index: 1, kind: input, shape index: {}]   ;;  %s509_s0 = inlined_call_operand.vmem [shape: bf16[32,256], index: 0, kind: input, shape index: {}]   ;;  %s510_s2 = inlined_call_operand.vmem [shape: bf16[32,128], index: 2, kind: output, shape index: {0}]   ;;  %s511_s3 = inlined_call_operand.vmem [shape: f32[8,128], index: 3, kind: output, shape index: {1}]   ;;  %s512_s4 = inlined_call_operand.vmem [shape: f32[8,128], index: 4, kind: output, shape index: {2}]  }
   0x1   :  { %v389_v0 = vld [vmem:[%s508_s1 + $0x78] sm:$0xff]   ;;  %v391_v2 = vld [vmem:[%s508_s1 + $0x70] sm:$0xff]   ;;  %v393_v4 = vld [vmem:[%s508_s1 + $0x68] sm:$0xff]  }
   0x2   :  { %v390_v1 = vld [vmem:[%s508_s1 + $0x38] sm:$0xff]   ;;  %345 = vmatprep.subr.bf16.mxu0 %v389_v0  ;;  %373 = vmatprep.subr.bf16.mxu1 %v389_v0  ;;  %v392_v3 = vld [vmem:[%s508_s1 + $0x30] sm:$0xff]   ;;  %v394_v5 = vld [vmem:[%s508_s1 + $0x28] sm:$0xff]  }
   0x3   :  { %346 = vmatpush3.bf16.msra.mxu0 %v390_v1  ;;  %381 = vmatpush3.bf16.msra.mxu1 %v390_v1  ;;  %v395_v6 = vld [vmem:[%s508_s1 + $0x60] sm:$0xff]   ;;  %v397_v8 = vld [vmem:[%s508_s1 + $0x58] sm:$0xff]   ;;  %v399_v10 = vld [vmem:[%s508_s1 + $0x50] sm:$0xff]  }
   0x4   :  { %347 = vmatprep.subr.bf16.mxu0 %v391_v2  ;;  %374 = vmatprep.subr.bf16.mxu1 %v391_v2  ;;  %v396_v7 = vld [vmem:[%s508_s1 + $0x20] sm:$0xff]   ;;  %v398_v9 = vld [vmem:[%s508_s1 + $0x18] sm:$0xff]   ;;  %v400_v13 = vld [vmem:[%s508_s1 + $0x10] sm:$0xff]  }
   0x5   :  { %v407_v11 = vld [vmem:[%s509_s0 + $0x4] ss:$8 sps:$4 sm:$0xff]   ;;  %v410_v12 = vld [vmem:[%s509_s0 + $0x14] ss:$8 sps:$4 sm:$0xff]   ;;  %v405_v18 = vld [vmem:[%s509_s0] ss:$8 sps:$4 sm:$0xff]  }
   0x6   :  { %v401_v14 = vld [vmem:[%s508_s1 + $0x48] sm:$0xff]   ;;  %216 = vmatprep.mubr.bf16.mxu0 %v407_v11  ;;  %224 = vmatprep.mubr.bf16.mxu1 %v410_v12  ;;  %v403_v16 = vld [vmem:[%s508_s1 + $0x40] sm:$0xff]   ;;  %v408_v19 = vld [vmem:[%s509_s0 + $0x10] ss:$8 sps:$4 sm:$0xff]  }
   0x7   :  { %348 = vmatpush3.bf16.msra.mxu0 %v392_v3  ;;  %382 = vmatpush3.bf16.msra.mxu1 %v392_v3  ;;  %v402_v15 = vld [vmem:[%s508_s1 + $0x8] sm:$0xff]   ;;  %v404_v17 = vld [vmem:[%s508_s1] sm:$0xff]  }
   0x8   :  { %349 = vmatprep.subr.bf16.mxu0 %v393_v4  ;;  %375 = vmatprep.subr.bf16.mxu1 %v393_v4 }
   0xb   :  { %350 = vmatpush3.bf16.msra.mxu0 %v394_v5  ;;  %383 = vmatpush3.bf16.msra.mxu1 %v394_v5 }
   0xc   :  { %351 = vmatprep.subr.bf16.mxu0 %v395_v6  ;;  %376 = vmatprep.subr.bf16.mxu1 %v395_v6 }
   0xf   :  { %352 = vmatpush3.bf16.msra.mxu0 %v396_v7  ;;  %384 = vmatpush3.bf16.msra.mxu1 %v396_v7 }
  0x10   :  { %353 = vmatprep.subr.bf16.mxu0 %v397_v8  ;;  %377 = vmatprep.subr.bf16.mxu1 %v397_v8 }
  0x13   :  { %354 = vmatpush3.bf16.msra.mxu0 %v398_v9  ;;  %385 = vmatpush3.bf16.msra.mxu1 %v398_v9 }
  0x14   :  { %355 = vmatprep.subr.bf16.mxu0 %v399_v10  ;;  %378 = vmatprep.subr.bf16.mxu1 %v399_v10 }
  0x17   :  { %356 = vmatpush3.bf16.msra.mxu0 %v400_v13  ;;  %386 = vmatpush3.bf16.msra.mxu1 %v400_v13 }
  0x18   :  { %357 = vmatprep.subr.bf16.mxu0 %v401_v14  ;;  %379 = vmatprep.subr.bf16.mxu1 %v401_v14 }
  0x1b   :  { %358 = vmatpush3.bf16.msra.mxu0 %v402_v15  ;;  %387 = vmatpush3.bf16.msra.mxu1 %v402_v15 }
  0x1c   :  { %359 = vmatprep.subr.bf16.mxu0 %v403_v16  ;;  %380 = vmatprep.subr.bf16.mxu1 %v403_v16 }
  0x1f   :  { %360 = vmatpush3.bf16.msra.mxu0 %v404_v17  ;;  %388 = vmatpush3.bf16.msra.mxu1 %v404_v17 }
  0x22   :  { %217 = vmatmul.mubr.bf16.vlgmr.msra.gmra.mxu0 %v405_v18  ;;  %225 = vmatmul.mubr.bf16.vlgmr.msra.gmra.mxu1 %v408_v19 }
  0xe2   :  { %v361_v20 = vpop.f32.mrf.mxu0  ;;  %v367_v21 = vpop.f32.mrf.mxu1 }
  0xe4   :  { %v362_v22 = vpop.f32.mrf.mxu0  ;;  %v368_v23 = vpop.f32.mrf.mxu1 }
  0xe5   :  { %v363_v24 = vadd.f32 %v362_v22, %v361_v20  ;;  %v369_v29 = vadd.f32 %v368_v23, %v367_v21 }
  0xe6   :  { %v364_v25 = vpop.f32.mrf.mxu0  ;;  %v370_v26 = vpop.f32.mrf.mxu1 }
  0xe7   :  { %v277_v32 = vmul.f32 %v363_v24, %v363_v24  ;;  %v279_v37 = vmul.f32 %v369_v29, %v369_v29 }
  0xe8   :  { %v365_v27 = vpop.f32.mrf.mxu0  ;;  %v371_v28 = vpop.f32.mrf.mxu1 }
  0xe9   :  { %v366_v30 = vadd.f32 %v365_v27, %v364_v25  ;;  %v372_v31 = vadd.f32 %v371_v28, %v370_v26 }
  0xeb   :  { %v337_v33 = vpack.c.bf16 %v366_v30, %v363_v24  ;;  %v268_v34 = vadd.f32 %v366_v30, %v363_v24  ;;  %v278_v35 = vmul.f32 %v366_v30, %v366_v30  ;;  %v342_v36 = vpack.c.bf16 %v372_v31, %v369_v29 }
  0xec   :  { %v280_v41 = vmul.f32 %v372_v31, %v372_v31 }
  0xed   :  { %338 = vst [vmem:[%s510_s2] sm:$0xff] %v337_v33   ;;  %v281_v38 = vadd.f32 %v278_v35, %v277_v32  ;;  %344 = vst [vmem:[%s510_s2 + $0x8] sm:$0xff] %v342_v36   ;;  %v269_v39 = vadd.f32 %v369_v29, %v268_v34 }
  0xef   :  { %v270_v40 = vadd.f32 %v372_v31, %v269_v39  ;;  %v282_v42 = vadd.f32 %v281_v38, %v279_v37 }
  0xf1   :  { %v271_v43 = vrot.slane %v270_v40, 4  ;;  %v283_v44 = vadd.f32 %v282_v42, %v280_v41 }
  0xf3   :  { %v272_v45 = vadd.f32 %v271_v43, %v270_v40  ;;  %v284_v46 = vrot.slane %v283_v44, 4 }
  0xf5   :  { %v273_v47 = vrot.slane %v272_v45, 2  ;;  %v285_v48 = vadd.f32 %v284_v46, %v283_v44 }
  0xf7   :  { %v274_v49 = vadd.f32 %v273_v47, %v272_v45  ;;  %v286_v50 = vrot.slane %v285_v48, 2 }
  0xf9   :  { %v275_v51 = vrot.slane %v274_v49, 1  ;;  %v287_v52 = vadd.f32 %v286_v50, %v285_v48 }
  0xfb   :  { %v276_v53 = vadd.f32 %v275_v51, %v274_v49  ;;  %v288_v54 = vrot.slane %v287_v52, 1 }
  0xfd   :  { %v289_v55 = vadd.f32 %v288_v54, %v287_v52  ;;  %290 = vst [vmem:[%s511_s3] sm:$0xff] %v276_v53 }
  0xff   :  { %291 = vst [vmem:[%s512_s4] sm:$0xff] %v289_v55 }

// kernel: _lambda_.12
= control target key start
LH: loop header
LB: loop body
LE: loop exit
PB: predicated region body
PF: predicated region fallthrough
CT: control target
= control target key end

     0   :  { %s148_s0 = inlined_call_operand.vmem [shape: bf16[32,128], index: 0, kind: input, shape index: {}]   ;;  %s149_s1 = inlined_call_operand.vmem [shape: f32[1,128], index: 1, kind: input, shape index: {}]   ;;  %s150_s2 = inlined_call_operand.vmem [shape: f32[1,128], index: 2, kind: input, shape index: {}]   ;;  %s151_s3 = inlined_call_operand.vmem [shape: bf16[32,128], index: 3, kind: output, shape index: {}]  }
   0x1   :  { %v91_v0 = vld [vmem:[%s148_s0] sm:$0xff]   ;;  %v108_v4 = vld [vmem:[%s148_s0 + $0x8] sm:$0xff]  }
   0x2   :  { %v80_v1 = vld [vmem:[%s149_s1] ss:$0 sm:$0xff]  ;;  %v92_v2 = vunpack.c.l.bf16 %v91_v0  ;;  %v93_v3 = vunpack.c.h.bf16 %v91_v0  ;;  %v96_v6 = vunpack.c.l.bf16 %v108_v4  ;;  %v97_v7 = vunpack.c.h.bf16 %v108_v4 }
   0x3   :  { %v81_v5 = vld [vmem:[%s150_s2] ss:$0 sm:$0xff] }
   0x4   :  { %v29_v8 = vmul.f32 %v92_v2, %v80_v1  ;;  %v30_v9 = vmul.f32 %v93_v3, %v80_v1  ;;  %v31_v10 = vmul.f32 %v96_v6, %v80_v1  ;;  %v32_v11 = vmul.f32 %v97_v7, %v80_v1 }
   0x6   :  { %v40_v12 = vadd.f32 %v81_v5, %v29_v8  ;;  %v41_v13 = vadd.f32 %v81_v5, %v30_v9  ;;  %v42_v14 = vadd.f32 %v81_v5, %v31_v10  ;;  %v43_v15 = vadd.f32 %v81_v5, %v32_v11 }
   0x8   :  { %vm44_vm0 = vcmp.ge.f32.partialorder %v40_v12, 0.0  ;;  %vm45_vm1 = vcmp.ge.f32.partialorder %v41_v13, 0.0  ;;  %v48_v16 = vmul.f32 0.2, %v40_v12  ;;  %v49_v17 = vmul.f32 0.2, %v41_v13 }
   0x9   :  { %vm46_vm2 = vcmp.ge.f32.partialorder %v42_v14, 0.0  ;;  %vm47_vm3 = vcmp.ge.f32.partialorder %v43_v15, 0.0  ;;  %v50_v18 = vmul.f32 0.2, %v42_v14  ;;  %v51_v19 = vmul.f32 0.2, %v43_v15 }
   0xa   :  { %v52_v20 = vsel %vm44_vm0, %v40_v12, %v48_v16  ;;  %v53_v21 = vsel %vm45_vm1, %v41_v13, %v49_v17 }
   0xb   :  { %v101_v22 = vpack.c.bf16 %v53_v21, %v52_v20  ;;  %v54_v23 = vsel %vm46_vm2, %v42_v14, %v50_v18  ;;  %v55_v24 = vsel %vm47_vm3, %v43_v15, %v51_v19 }
   0xc   :  { %v106_v25 = vpack.c.bf16 %v55_v24, %v54_v23 }
   0xd   :  { %102 = vst [vmem:[%s151_s3] sm:$0xff] %v101_v22  }
   0xe   :  { %109 = vst [vmem:[%s151_s3 + $0x8] sm:$0xff] %v106_v25  }

// kernel: _lambda_.13
= control target key start
LH: loop header
LB: loop body
LE: loop exit
PB: predicated region body
PF: predicated region fallthrough
CT: control target
= control target key end

     0   :  { %s823_s1 = inlined_call_operand.vmem [shape: bf16[512,128], index: 1, kind: input, shape index: {}]   ;;  %s824_s0 = inlined_call_operand.vmem [shape: bf16[32,512], index: 0, kind: input, shape index: {}]   ;;  %s825_s2 = inlined_call_operand.vmem [shape: bf16[32,128], index: 2, kind: output, shape index: {0}]   ;;  %s826_s3 = inlined_call_operand.vmem [shape: f32[8,128], index: 3, kind: output, shape index: {1}]   ;;  %s827_s4 = inlined_call_operand.vmem [shape: f32[8,128], index: 4, kind: output, shape index: {2}]  }
   0x1   :  { %v622_v0 = vld [vmem:[%s823_s1 + $0x78] sm:$0xff]   ;;  %v626_v4 = vld [vmem:[%s823_s1 + $0x70] sm:$0xff]   ;;  %v630_v8 = vld [vmem:[%s823_s1 + $0x68] sm:$0xff]  }
   0x2   :  { %v623_v1 = vld [vmem:[%s823_s1 + $0xf8] sm:$0xff]   ;;  %566 = vmatprep.subr.bf16.mxu0 %v622_v0  ;;  %v627_v5 = vld [vmem:[%s823_s1 + $0xf0] sm:$0xff]   ;;  %v631_v9 = vld [vmem:[%s823_s1 + $0xe8] sm:$0xff]  }
   0x3   :  { %v624_v2 = vld [vmem:[%s823_s1 + $0x38] sm:$0xff]   ;;  %594 = vmatprep.subr.bf16.mxu1 %v623_v1  ;;  %v628_v6 = vld [vmem:[%s823_s1 + $0x30] sm:$0xff]   ;;  %v632_v10 = vld [vmem:[%s823_s1 + $0x28] sm:$0xff]  }
   0x4   :  { %v625_v3 = vld [vmem:[%s823_s1 + $0xb8] sm:$0xff]   ;;  %567 = vmatpush3.bf16.msra.mxu0 %v624_v2  ;;  %v629_v7 = vld [vmem:[%s823_s1 + $0xb0] sm:$0xff]   ;;  %v633_v11 = vld [vmem:[%s823_s1 + $0xa8] sm:$0xff]  }
   0x5   :  { %595 = vmatpush3.bf16.msra.mxu1 %v625_v3  ;;  %568 = vmatprep.subr.bf16.mxu0 %v626_v4  ;;  %v634_v12 = vld [vmem:[%s823_s1 + $0x60] sm:$0xff]   ;;  %v638_v16 = vld [vmem:[%s823_s1 + $0x58] sm:$0xff]   ;;  %v642_v20 = vld [vmem:[%s823_s1 + $0x50] sm:$0xff]  }
   0x6   :  { %596 = vmatprep.subr.bf16.mxu1 %v627_v5  ;;  %v635_v13 = vld [vmem:[%s823_s1 + $0xe0] sm:$0xff]   ;;  %v639_v17 = vld [vmem:[%s823_s1 + $0xd8] sm:$0xff]   ;;  %v643_v21 = vld [vmem:[%s823_s1 + $0xd0] sm:$0xff]  }
   0x7   :  { %v636_v14 = vld [vmem:[%s823_s1 + $0x20] sm:$0xff]   ;;  %v640_v18 = vld [vmem:[%s823_s1 + $0x18] sm:$0xff]   ;;  %v644_v22 = vld [vmem:[%s823_s1 + $0x10] sm:$0xff]  }
   0x8   :  { %569 = vmatpush3.bf16.msra.mxu0 %v628_v6  ;;  %v637_v15 = vld [vmem:[%s823_s1 + $0xa0] sm:$0xff]   ;;  %v641_v19 = vld [vmem:[%s823_s1 + $0x98] sm:$0xff]   ;;  %v645_v23 = vld [vmem:[%s823_s1 + $0x90] sm:$0xff]  }
   0x9   :  { %597 = vmatpush3.bf16.msra.mxu1 %v629_v7  ;;  %570 = vmatprep.subr.bf16.mxu0 %v630_v8  ;;  %v646_v24 = vld [vmem:[%s823_s1 + $0x48] sm:$0xff]   ;;  %v650_v28 = vld [vmem:[%s823_s1 + $0x40] sm:$0xff]  }
   0xa   :  { %598 = vmatprep.subr.bf16.mxu1 %v631_v9  ;;  %v647_v25 = vld [vmem:[%s823_s1 + $0xc8] sm:$0xff]   ;;  %v651_v29 = vld [vmem:[%s823_s1 + $0xc0] sm:$0xff]  }
   0xb   :  { %v648_v26 = vld [vmem:[%s823_s1 + $0x8] sm:$0xff]   ;;  %v652_v30 = vld [vmem:[%s823_s1] sm:$0xff]  }
   0xc   :  { %571 = vmatpush3.bf16.msra.mxu0 %v632_v10  ;;  %v649_v27 = vld [vmem:[%s823_s1 + $0x88] sm:$0xff]   ;;  %v653_v31 = vld [vmem:[%s823_s1 + $0x80] sm:$0xff]  }
   0xd   :  { %599 = vmatpush3.bf16.msra.mxu1 %v633_v11  ;;  %572 = vmatprep.subr.bf16.mxu0 %v634_v12  ;;  %v654_v32 = vld [vmem:[%s824_s0] ss:$16 sps:$4 sm:$0xff]   ;;  %v656_v33 = vld [vmem:[%s824_s0 + $0x4] ss:$16 sps:$4 sm:$0xff]   ;;  %v657_v34 = vld [vmem:[%s824_s0 + $0x8] ss:$16 sps:$4 sm:$0xff]  }
   0xe   :  { %600 = vmatprep.subr.bf16.mxu1 %v635_v13  ;;  %v659_v35 = vld [vmem:[%s824_s0 + $0xc] ss:$16 sps:$4 sm:$0xff]   ;;  %368 = vmatprep.mubr.bf16.mxu0 %v656_v33  ;;  %v660_v36 = vld [vmem:[%s824_s0 + $0x24] ss:$16 sps:$4 sm:$0xff]   ;;  %v664_v38 = vld [vmem:[%s824_s0 + $0x20] ss:$16 sps:$4 sm:$0xff]  }
   0xf   :  { %417 = vmatprep.mubr.bf16.mxu1 %v659_v35  ;;  %v662_v37 = vld [vmem:[%s824_s0 + $0x2c] ss:$16 sps:$4 sm:$0xff]   ;;  %v665_v39 = vld [vmem:[%s824_s0 + $0x28] ss:$16 sps:$4 sm:$0xff]  }
  0x10   :  { %573 = vmatpush3.bf16.msra.mxu0 %v636_v14 }
  0x11   :  { %601 = vmatpush3.bf16.msra.mxu1 %v637_v15  ;;  %574 = vmatprep.subr.bf16.mxu0 %v638_v16 }
  0x12   :  { %602 = vmatprep.subr.bf16.mxu1 %v639_v17 }
  0x14   :  { %575 = vmatpush3.bf16.msra.mxu0 %v640_v18 }
  0x15   :  { %603 = vmatpush3.bf16.msra.mxu1 %v641_v19  ;;  %576 = vmatprep.subr.bf16.mxu0 %v642_v20 }
  0x16   :  { %604 = vmatprep.subr.bf16.mxu1 %v643_v21 }
  0x18   :  { %577 = vmatpush3.bf16.msra.mxu0 %v644_v22 }
  0x19   :  { %605 = vmatpush3.bf16.msra.mxu1 %v645_v23  ;;  %578 = vmatprep.subr.bf16.mxu0 %v646_v24 }
  0x1a   :  { %606 = vmatprep.subr.bf16.mxu1 %v647_v25 }
  0x1c   :  { %579 = vmatpush3.bf16.msra.mxu0 %v648_v26 }
  0x1d   :  { %607 = vmatpush3.bf16.msra.mxu1 %v649_v27  ;;  %580 = vmatprep.subr.bf16.mxu0 %v650_v28 }
  0x1e   :  { %608 = vmatprep.subr.bf16.mxu1 %v651_v29 }
  0x20   :  { %581 = vmatpush3.bf16.msra.mxu0 %v652_v30 }
  0x21   :  { %609 = vmatpush3.bf16.msra.mxu1 %v653_v31 }
  0x23   :  { %369 = vmatmul.mubr.bf16.vlgmr.msra.gmra.mxu0 %v654_v32 }
  0x24   :  { %418 = vmatmul.mubr.bf16.vlgmr.msra.gmra.mxu1 %v657_v34  ;;  %376 = vmatprep.mubr.bf16.mxu0 %v660_v36 }
  0x25   :  { %425 = vmatprep.mubr.bf16.mxu1 %v662_v37 }
  0x2b   :  { %377 = vmatmul.mubr.bf16.gmra.mxu0 %v664_v38 }
  0x2c   :  { %426 = vmatmul.mubr.bf16.gmra.mxu1 %v665_v39 }
  0xe3   :  { %v582_v40 = vpop.f32.mrf.mxu0 }
  0xe4   :  { %v610_v41 = vpop.f32.mrf.mxu1 }
  0xe5   :  { %v583_v42 = vpop.f32.mrf.mxu0 }
  0xe6   :  { %v611_v43 = vpop.f32.mrf.mxu1  ;;  %v584_v46 = vadd.f32 %v583_v42, %v582_v40 }
  0xe7   :  { %v585_v44 = vpop.f32.mrf.mxu0  ;;  %v612_v47 = vadd.f32 %v611_v43, %v610_v41 }
  0xe8   :  { %v613_v45 = vpop.f32.mrf.mxu1 }
  0xe9   :  { %v586_v48 = vpop.f32.mrf.mxu0  ;;  %v420_v54 = vadd.f32 %v612_v47, %v584_v46 }
  0xea   :  { %v587_v49 = vadd.f32 %v586_v48, %v585_v44  ;;  %v614_v50 = vpop.f32.mrf.mxu1 }
  0xeb   :  { %v615_v51 = vadd.f32 %v614_v50, %v613_v45  ;;  %v588_v52 = vpop.f32.mrf.mxu0  ;;  %v478_v4 = vmul.f32 %v420_v54, %v420_v54 }
  0xec   :  { %v616_v53 = vpop.f32.mrf.mxu1 }
  0xed   :  { %v423_v55 = vadd.f32 %v615_v51, %v587_v49  ;;  %v589_v56 = vpop.f32.mrf.mxu0 }
  0xee   :  { %v590_v57 = vadd.f32 %v589_v56, %v588_v52  ;;  %v617_v58 = vpop.f32.mrf.mxu1 }
  0xef   :  { %v558_v59 = vpack.c.bf16 %v423_v55, %v420_v54  ;;  %v618_v60 = vadd.f32 %v617_v58, %v616_v53  ;;  %v591_v61 = vpop.f32.mrf.mxu0  ;;  %v479_v63 = vmul.f32 %v423_v55, %v423_v55  ;;  %v469_v5 = vadd.f32 %v423_v55, %v420_v54 }
  0xf0   :  { %v619_v62 = vpop.f32.mrf.mxu1 }
  0xf1   :  { %559 = vst [vmem:[%s825_s2] sm:$0xff] %v558_v59   ;;  %v428_v0 = vadd.f32 %v618_v60, %v590_v57  ;;  %v592_v1 = vpop.f32.mrf.mxu0  ;;  %v482_v8 = vadd.f32 %v479_v63, %v478_v4 }
  0xf2   :  { %v593_v2 = vadd.f32 %v592_v1, %v591_v61  ;;  %v620_v3 = vpop.f32.mrf.mxu1 }
  0xf3   :  { %v480_v6 = vmul.f32 %v428_v0, %v428_v0  ;;  %v621_v7 = vadd.f32 %v620_v3, %v619_v62  ;;  %v470_v9 = vadd.f32 %v469_v5, %v428_v0 }
  0xf5   :  { %v431_v10 = vadd.f32 %v621_v7, %v593_v2  ;;  %v483_v11 = vadd.f32 %v482_v8, %v480_v6 }
  0xf7   :  { %v563_v12 = vpack.c.bf16 %v431_v10, %v428_v0  ;;  %v471_v13 = vadd.f32 %v470_v9, %v431_v10  ;;  %v481_v14 = vmul.f32 %v431_v10, %v431_v10 }
  0xf9   :  { %565 = vst [vmem:[%s825_s2 + $0x8] sm:$0xff] %v563_v12   ;;  %v472_v15 = vrot.slane %v471_v13, 4  ;;  %v484_v16 = vadd.f32 %v483_v11, %v481_v14 }
  0xfb   :  { %v473_v17 = vadd.f32 %v472_v15, %v471_v13  ;;  %v485_v18 = vrot.slane %v484_v16, 4 }
  0xfd   :  { %v474_v19 = vrot.slane %v473_v17, 2  ;;  %v486_v20 = vadd.f32 %v485_v18, %v484_v16 }
  0xff   :  { %v475_v21 = vadd.f32 %v474_v19, %v473_v17  ;;  %v487_v22 = vrot.slane %v486_v20, 2 }
 0x101   :  { %v476_v23 = vrot.slane %v475_v21, 1  ;;  %v488_v24 = vadd.f32 %v487_v22, %v486_v20 }
 0x103   :  { %v477_v25 = vadd.f32 %v476_v23, %v475_v21  ;;  %v489_v26 = vrot.slane %v488_v24, 1 }
 0x105   :  { %v490_v27 = vadd.f32 %v489_v26, %v488_v24  ;;  %491 = vst [vmem:[%s826_s3] sm:$0xff] %v477_v25 }
 0x107   :  { %492 = vst [vmem:[%s827_s4] sm:$0xff] %v490_v27 }

// kernel: _lambda_.15
= control target key start
LH: loop header
LB: loop body
LE: loop exit
PB: predicated region body
PF: predicated region fallthrough
CT: control target
= control target key end

     0   :  { %s1248_s1 = inlined_call_operand.vmem [shape: bf16[1024,128], index: 1, kind: input, shape index: {}]   ;;  %s1249_s0 = inlined_call_operand.vmem [shape: bf16[16,1024], index: 0, kind: input, shape index: {}]   ;;  %s1250_s2 = inlined_call_operand.vmem [shape: f32[1,128], index: 2, kind: input, shape index: {}]   ;;  %s1251_s3 = inlined_call_operand.vmem [shape: f32[16,128], index: 3, kind: output, shape index: {}]  }
   0x1   :  { %v939_v0 = vld [vmem:[%s1248_s1 + $0x78] sm:$0xff]   ;;  %v943_v4 = vld [vmem:[%s1248_s1 + $0x70] sm:$0xff]   ;;  %v947_v8 = vld [vmem:[%s1248_s1 + $0x68] sm:$0xff]  }
   0x2   :  { %v940_v1 = vld [vmem:[%s1248_s1 + $0xf8] sm:$0xff]   ;;  %851 = vmatprep.subr.bf16.mxu0 %v939_v0  ;;  %v944_v5 = vld [vmem:[%s1248_s1 + $0xf0] sm:$0xff]   ;;  %v948_v9 = vld [vmem:[%s1248_s1 + $0xe8] sm:$0xff]  }
   0x3   :  { %v941_v2 = vld [vmem:[%s1248_s1 + $0x38] sm:$0xff]   ;;  %873 = vmatprep.subr.bf16.mxu1 %v940_v1  ;;  %v945_v6 = vld [vmem:[%s1248_s1 + $0x30] sm:$0xff]   ;;  %v949_v10 = vld [vmem:[%s1248_s1 + $0x28] sm:$0xff]  }
   0x4   :  { %v942_v3 = vld [vmem:[%s1248_s1 + $0xb8] sm:$0xff]   ;;  %852 = vmatpush3.bf16.msra.mxu0 %v941_v2  ;;  %v946_v7 = vld [vmem:[%s1248_s1 + $0xb0] sm:$0xff]   ;;  %v950_v11 = vld [vmem:[%s1248_s1 + $0xa8] sm:$0xff]  }
   0x5   :  { %874 = vmatpush3.bf16.msra.mxu1 %v942_v3  ;;  %853 = vmatprep.subr.bf16.mxu0 %v943_v4  ;;  %v951_v12 = vld [vmem:[%s1248_s1 + $0x60] sm:$0xff]   ;;  %v955_v16 = vld [vmem:[%s1248_s1 + $0x58] sm:$0xff]   ;;  %v959_v20 = vld [vmem:[%s1248_s1 + $0x50] sm:$0xff]  }
   0x6   :  { %875 = vmatprep.subr.bf16.mxu1 %v944_v5  ;;  %v952_v13 = vld [vmem:[%s1248_s1 + $0xe0] sm:$0xff]   ;;  %v956_v17 = vld [vmem:[%s1248_s1 + $0xd8] sm:$0xff]   ;;  %v960_v21 = vld [vmem:[%s1248_s1 + $0xd0] sm:$0xff]  }
   0x7   :  { %v953_v14 = vld [vmem:[%s1248_s1 + $0x20] sm:$0xff]   ;;  %v957_v18 = vld [vmem:[%s1248_s1 + $0x18] sm:$0xff]   ;;  %v961_v22 = vld [vmem:[%s1248_s1 + $0x10] sm:$0xff]  }
   0x8   :  { %854 = vmatpush3.bf16.msra.mxu0 %v945_v6  ;;  %v954_v15 = vld [vmem:[%s1248_s1 + $0xa0] sm:$0xff]   ;;  %v958_v19 = vld [vmem:[%s1248_s1 + $0x98] sm:$0xff]   ;;  %v962_v23 = vld [vmem:[%s1248_s1 + $0x90] sm:$0xff]  }
   0x9   :  { %876 = vmatpush3.bf16.msra.mxu1 %v946_v7  ;;  %855 = vmatprep.subr.bf16.mxu0 %v947_v8  ;;  %v963_v24 = vld [vmem:[%s1248_s1 + $0x48] sm:$0xff]   ;;  %v967_v28 = vld [vmem:[%s1248_s1 + $0x40] sm:$0xff]   ;;  %v971_v40 = vld [vmem:[%s1248_s1 + $0x178] sm:$0xff]  }
   0xa   :  { %877 = vmatprep.subr.bf16.mxu1 %v948_v9  ;;  %v964_v25 = vld [vmem:[%s1248_s1 + $0xc8] sm:$0xff]   ;;  %v968_v29 = vld [vmem:[%s1248_s1 + $0xc0] sm:$0xff]   ;;  %v972_v41 = vld [vmem:[%s1248_s1 + $0x1f8] sm:$0xff]  }
   0xb   :  { %v965_v26 = vld [vmem:[%s1248_s1 + $0x8] sm:$0xff]   ;;  %v969_v30 = vld [vmem:[%s1248_s1] sm:$0xff]   ;;  %v973_v42 = vld [vmem:[%s1248_s1 + $0x138] sm:$0xff]  }
   0xc   :  { %856 = vmatpush3.bf16.msra.mxu0 %v949_v10  ;;  %v966_v27 = vld [vmem:[%s1248_s1 + $0x88] sm:$0xff]   ;;  %v970_v31 = vld [vmem:[%s1248_s1 + $0x80] sm:$0xff]   ;;  %v974_v43 = vld [vmem:[%s1248_s1 + $0x1b8] sm:$0xff]  }
   0xd   :  { %878 = vmatpush3.bf16.msra.mxu1 %v950_v11  ;;  %857 = vmatprep.subr.bf16.mxu0 %v951_v12  ;;  %v24_v32 = vld [vmem:[%s1249_s0] sm:$0xff]  ;;  %v25_v34 = vld [vmem:[%s1249_s0 + $0x8] sm:$0xff]  ;;  %v975_v44 = vld [vmem:[%s1248_s1 + $0x170] sm:$0xff]  }
   0xe   :  { %879 = vmatprep.subr.bf16.mxu1 %v952_v13  ;;  %v28_v33 = vld [vmem:[%s1249_s0 + $0x20] sm:$0xff]  ;;  %v29_v37 = vld [vmem:[%s1249_s0 + $0x28] sm:$0xff]  ;;  %v976_v45 = vld [vmem:[%s1248_s1 + $0x1f0] sm:$0xff]  }
   0xf   :  { %v778_v35 = vcombine.low %v24_v32, %v28_v33  ;;  %v779_v36 = vcombine.high %v24_v32, %v28_v33  ;;  %v780_v38 = vcombine.low %v25_v34, %v29_v37  ;;  %v781_v39 = vcombine.high %v25_v34, %v29_v37  ;;  %v977_v46 = vld [vmem:[%s1248_s1 + $0x130] sm:$0xff]   ;;  %v979_v48 = vld [vmem:[%s1248_s1 + $0x168] sm:$0xff]   ;;  %v983_v52 = vld [vmem:[%s1248_s1 + $0x160] sm:$0xff]  }
  0x10   :  { %858 = vmatpush3.bf16.msra.mxu0 %v953_v14  ;;  %v978_v47 = vld [vmem:[%s1248_s1 + $0x1b0] sm:$0xff]   ;;  %v980_v49 = vld [vmem:[%s1248_s1 + $0x1e8] sm:$0xff]   ;;  %v984_v53 = vld [vmem:[%s1248_s1 + $0x1e0] sm:$0xff]  }
  0x11   :  { %880 = vmatpush3.bf16.msra.mxu1 %v954_v15  ;;  %859 = vmatprep.subr.bf16.mxu0 %v955_v16  ;;  %v981_v50 = vld [vmem:[%s1248_s1 + $0x128] sm:$0xff]   ;;  %v985_v54 = vld [vmem:[%s1248_s1 + $0x120] sm:$0xff]   ;;  %v987_v56 = vld [vmem:[%s1248_s1 + $0x158] sm:$0xff]  }
  0x12   :  { %881 = vmatprep.subr.bf16.mxu1 %v956_v17  ;;  %620 = vmatprep.mubr.bf16.mxu0 %v779_v36  ;;  %v982_v51 = vld [vmem:[%s1248_s1 + $0x1a8] sm:$0xff]   ;;  %v986_v55 = vld [vmem:[%s1248_s1 + $0x1a0] sm:$0xff]   ;;  %v988_v57 = vld [vmem:[%s1248_s1 + $0x1d8] sm:$0xff]  }
  0x13   :  { %661 = vmatprep.mubr.bf16.mxu1 %v781_v39  ;;  %v989_v58 = vld [vmem:[%s1248_s1 + $0x118] sm:$0xff]   ;;  %v991_v60 = vld [vmem:[%s1248_s1 + $0x150] sm:$0xff]   ;;  %v995_v0 = vld [vmem:[%s1248_s1 + $0x148] sm:$0xff]  }
  0x14   :  { %860 = vmatpush3.bf16.msra.mxu0 %v957_v18  ;;  %v990_v59 = vld [vmem:[%s1248_s1 + $0x198] sm:$0xff]   ;;  %v992_v61 = vld [vmem:[%s1248_s1 + $0x1d0] sm:$0xff]   ;;  %v996_v1 = vld [vmem:[%s1248_s1 + $0x1c8] sm:$0xff]  }
  0x15   :  { %882 = vmatpush3.bf16.msra.mxu1 %v958_v19  ;;  %861 = vmatprep.subr.bf16.mxu0 %v959_v20  ;;  %v993_v62 = vld [vmem:[%s1248_s1 + $0x110] sm:$0xff]   ;;  %v997_v2 = vld [vmem:[%s1248_s1 + $0x108] sm:$0xff]   ;;  %v999_v4 = vld [vmem:[%s1248_s1 + $0x140] sm:$0xff]  }
  0x16   :  { %883 = vmatprep.subr.bf16.mxu1 %v960_v21  ;;  %v994_v63 = vld [vmem:[%s1248_s1 + $0x190] sm:$0xff]   ;;  %v998_v3 = vld [vmem:[%s1248_s1 + $0x188] sm:$0xff]   ;;  %v1000_v5 = vld [vmem:[%s1248_s1 + $0x1c0] sm:$0xff]  }
  0x17   :  { %v1001_v6 = vld [vmem:[%s1248_s1 + $0x100] sm:$0xff]   ;;  %v26_v8 = vld [vmem:[%s1249_s0 + $0x10] sm:$0xff]  ;;  %v27_v12 = vld [vmem:[%s1249_s0 + $0x18] sm:$0xff] }
  0x18   :  { %862 = vmatpush3.bf16.msra.mxu0 %v961_v22  ;;  %v1002_v7 = vld [vmem:[%s1248_s1 + $0x180] sm:$0xff]   ;;  %v30_v9 = vld [vmem:[%s1249_s0 + $0x30] sm:$0xff]  ;;  %v31_v13 = vld [vmem:[%s1249_s0 + $0x38] sm:$0xff] }
  0x19   :  { %884 = vmatpush3.bf16.msra.mxu1 %v962_v23  ;;  %863 = vmatprep.subr.bf16.mxu0 %v963_v24  ;;  %v782_v10 = vcombine.low %v26_v8, %v30_v9  ;;  %v783_v11 = vcombine.high %v26_v8, %v30_v9  ;;  %v784_v14 = vcombine.low %v27_v12, %v31_v13 }
  0x1a   :  { %885 = vmatprep.subr.bf16.mxu1 %v964_v25  ;;  %v785_v15 = vcombine.high %v27_v12, %v31_v13 }
  0x1c   :  { %864 = vmatpush3.bf16.msra.mxu0 %v965_v26 }
  0x1d   :  { %886 = vmatpush3.bf16.msra.mxu1 %v966_v27  ;;  %865 = vmatprep.subr.bf16.mxu0 %v967_v28 }
  0x1e   :  { %887 = vmatprep.subr.bf16.mxu1 %v968_v29 }
  0x20   :  { %866 = vmatpush3.bf16.msra.mxu0 %v969_v30 }
  0x21   :  { %888 = vmatpush3.bf16.msra.mxu1 %v970_v31  ;;  %895 = vmatprep.subr.bf16.mxu0 %v971_v40 }
  0x22   :  { %917 = vmatprep.subr.bf16.mxu1 %v972_v41 }
  0x23   :  { %621 = vmatmul.mubr.bf16.vlgmr.msra.gmra.mxu0 %v778_v35 }
  0x24   :  { %662 = vmatmul.mubr.bf16.vlgmr.msra.gmra.mxu1 %v780_v38  ;;  %896 = vmatpush3.bf16.msra.mxu0 %v973_v42  ;;  %v850_v38 = vld [vmem:[%s1250_s2] ss:$0 sm:$0xff] }
  0x25   :  { %918 = vmatpush3.bf16.msra.mxu1 %v974_v43  ;;  %897 = vmatprep.subr.bf16.mxu0 %v975_v44 }
  0x26   :  { %919 = vmatprep.subr.bf16.mxu1 %v976_v45  ;;  %702 = vmatprep.mubr.bf16.mxu0 %v783_v11 }
  0x27   :  { %743 = vmatprep.mubr.bf16.mxu1 %v785_v15 }
  0x28   :  { %898 = vmatpush3.bf16.msra.mxu0 %v977_v46 }
  0x29   :  { %920 = vmatpush3.bf16.msra.mxu1 %v978_v47  ;;  %899 = vmatprep.subr.bf16.mxu0 %v979_v48 }
  0x2a   :  { %921 = vmatprep.subr.bf16.mxu1 %v980_v49 }
  0x2c   :  { %900 = vmatpush3.bf16.msra.mxu0 %v981_v50 }
  0x2d   :  { %922 = vmatpush3.bf16.msra.mxu1 %v982_v51  ;;  %901 = vmatprep.subr.bf16.mxu0 %v983_v52 }
  0x2e   :  { %923 = vmatprep.subr.bf16.mxu1 %v984_v53 }
  0x30   :  { %902 = vmatpush3.bf16.msra.mxu0 %v985_v54 }
  0x31   :  { %924 = vmatpush3.bf16.msra.mxu1 %v986_v55  ;;  %903 = vmatprep.subr.bf16.mxu0 %v987_v56 }
  0x32   :  { %925 = vmatprep.subr.bf16.mxu1 %v988_v57 }
  0x34   :  { %904 = vmatpush3.bf16.msra.mxu0 %v989_v58 }
  0x35   :  { %926 = vmatpush3.bf16.msra.mxu1 %v990_v59  ;;  %905 = vmatprep.subr.bf16.mxu0 %v991_v60 }
  0x36   :  { %927 = vmatprep.subr.bf16.mxu1 %v992_v61 }
  0x38   :  { %906 = vmatpush3.bf16.msra.mxu0 %v993_v62 }
  0x39   :  { %928 = vmatpush3.bf16.msra.mxu1 %v994_v63  ;;  %907 = vmatprep.subr.bf16.mxu0 %v995_v0 }
  0x3a   :  { %929 = vmatprep.subr.bf16.mxu1 %v996_v1 }
  0x3c   :  { %908 = vmatpush3.bf16.msra.mxu0 %v997_v2 }
  0x3d   :  { %930 = vmatpush3.bf16.msra.mxu1 %v998_v3  ;;  %909 = vmatprep.subr.bf16.mxu0 %v999_v4 }
  0x3e   :  { %931 = vmatprep.subr.bf16.mxu1 %v1000_v5 }
  0x40   :  { %910 = vmatpush3.bf16.msra.mxu0 %v1001_v6 }
  0x41   :  { %932 = vmatpush3.bf16.msra.mxu1 %v1002_v7 }
  0x43   :  { %703 = vmatmul.mubr.bf16.vlgmr.msra.gmra.mxu0 %v782_v10 }
  0x44   :  { %744 = vmatmul.mubr.bf16.vlgmr.msra.gmra.mxu1 %v784_v14 }
  0xe3   :  { %v867_v16 = vpop.f32.mrf.mxu0 }
  0xe4   :  { %v889_v17 = vpop.f32.mrf.mxu1 }
  0xe5   :  { %v868_v18 = vpop.f32.mrf.mxu0 }
  0xe6   :  { %v890_v19 = vpop.f32.mrf.mxu1  ;;  %v869_v23 = vadd.f32 %v868_v18, %v867_v16 }
  0xe7   :  { %v870_v20 = vpop.f32.mrf.mxu0  ;;  %v891_v24 = vadd.f32 %v890_v19, %v889_v17 }
  0xe8   :  { %v892_v21 = vpop.f32.mrf.mxu1 }
  0xe9   :  { %v871_v22 = vpop.f32.mrf.mxu0  ;;  %v664_v29 = vadd.f32 %v891_v24, %v869_v23 }
  0xea   :  { %v893_v25 = vpop.f32.mrf.mxu1  ;;  %v872_v30 = vadd.f32 %v871_v22, %v870_v20 }
  0xeb   :  { %v894_v31 = vadd.f32 %v893_v25, %v892_v21 }
  0xed   :  { %v667_v40 = vadd.f32 %v894_v31, %v872_v30 }
 0x103   :  { %v911_v26 = vpop.f32.mrf.mxu0 }
 0x104   :  { %v933_v27 = vpop.f32.mrf.mxu1 }
 0x105   :  { %v912_v28 = vpop.f32.mrf.mxu0 }
 0x106   :  { %v913_v32 = vadd.f32 %v912_v28, %v911_v26  ;;  %v934_v33 = vpop.f32.mrf.mxu1 }
 0x107   :  { %v914_v34 = vpop.f32.mrf.mxu0  ;;  %v935_v36 = vadd.f32 %v934_v33, %v933_v27 }
 0x108   :  { %v705_v35 = vadd.f32 %v913_v32, %v664_v29  ;;  %v936_v37 = vpop.f32.mrf.mxu1 }
 0x109   :  { %v915_v39 = vpop.f32.mrf.mxu0 }
 0x10a   :  { %v746_v41 = vadd.f32 %v935_v36, %v705_v35  ;;  %v916_v42 = vadd.f32 %v915_v39, %v914_v34  ;;  %v937_v43 = vpop.f32.mrf.mxu1 }
 0x10b   :  { %v938_v46 = vadd.f32 %v937_v43, %v936_v37 }
 0x10c   :  { %v768_v44 = vadd.f32 %v850_v38, %v746_v41  ;;  %v708_v45 = vadd.f32 %v916_v42, %v667_v40 }
 0x10e   :  { %770 = vst [vmem:[%s1251_s3] sm:$0xff] %v768_v44  ;;  %v749_v47 = vadd.f32 %v938_v46, %v708_v45 }
 0x110   :  { %v769_v48 = vadd.f32 %v850_v38, %v749_v47 }
 0x112   :  { %771 = vst [vmem:[%s1251_s3 + $0x8] sm:$0xff] %v769_v48 }

</bundles_post_ra>
